<compile_context>
chip_gen: v7x
topology: tpu7x:2x2x1
jax: 0.10.0
libtpu: 0.0.40
codegen_flags: <defaults>
</compile_context>

<pallas_src>
import jax
import jax.numpy as jnp
from jax.experimental import pallas as pl
from jax.experimental.pallas import tpu as pltpu


# ----------------------------------------------------------------------------
# Pallas kernel: out = act * mask
#   mask block (Rt, 1)  -> per-row mask, lane-broadcast over spatial   (conv path)
#   mask block (Rt, St) -> plain elementwise mask                      (dense path)
# ----------------------------------------------------------------------------
def _mask_mul_kernel(mask_ref, act_ref, out_ref):
    out_ref[...] = (act_ref[...].astype(jnp.float32) * mask_ref[...]).astype(out_ref.dtype)


def _vmem_limit_bytes():
    """Scoped-VMEM budget, derived from the running generation's physical VMEM."""
    cap = None
    try:
        cap = getattr(pltpu.get_tpu_info(), "vmem_capacity_bytes", None)
    except Exception:
        cap = None
    if not cap:
        cap = 64 * 1024 * 1024          # conservative default = v7x per-TC VMEM
    # Leave headroom for Mosaic internal scratch; cap at 96 MiB on 128 MiB parts.
    return int(min(cap - 16 * 1024 * 1024, 96 * 1024 * 1024))


def _row_align(dtype):
    # f32 -> 8 sublanes, bf16/f16 -> 16 (2 rows per sublane), int8/fp8 -> 32.
    return max(8, 32 // jnp.dtype(dtype).itemsize)


def _plan_tiles(R, S, itemsize, row_align, block_budget_bytes):
    """Largest aligned tile (or full extent) whose single block fits the budget."""
    max_elems = max(block_budget_bytes // itemsize, row_align * 128)
    # Lane axis: prefer full extent (lane-dense output, fewer grid steps); only tile
    # columns if even `row_align` rows of full-S do not fit in one block.
    if S * row_align <= max_elems:
        St = S
    else:
        St = max(128, ((max_elems // row_align) // 128) * 128)
        St = min(St, S)
    rows_fit = max(row_align, max_elems // max(St, 1))
    if rows_fit >= R:
        Rt = R                                       # full dim is always legal
    else:
        Rt = max(row_align, (rows_fit // row_align) * row_align)
    return Rt, St


def _masked_multiply(act2d, mask2d_f32):
    """Tiled broadcast / elementwise multiply of a 2-D activation by an f32 mask."""
    R, S = act2d.shape
    itemsize = jnp.dtype(act2d.dtype).itemsize
    vmem_limit = _vmem_limit_bytes()
    # act + out each double-buffered (4 live blocks) + mask + headroom -> limit // 6.
    block_budget = vmem_limit // 6
    Rt, St = _plan_tiles(R, S, itemsize, _row_align(act2d.dtype), block_budget)
    grid = (pl.cdiv(R, Rt), pl.cdiv(S, St))

    if mask2d_f32.shape[1] == 1:
        # Column axis is the inner grid axis and the mask block index is constant
        # across it, so the mask re-DMA is elided between consecutive steps.
        mask_spec = pl.BlockSpec((Rt, 1), lambda i, j: (i, 0))
    else:
        mask_spec = pl.BlockSpec((Rt, St), lambda i, j: (i, j))

    cost = pl.CostEstimate(
        flops=R * S,
        transcendentals=0,
        bytes_accessed=2 * R * S * itemsize + mask2d_f32.size * 4,
    )

    return pl.pallas_call(
        _mask_mul_kernel,
        out_shape=jax.ShapeDtypeStruct((R, S), act2d.dtype),
        grid=grid,
        in_specs=[mask_spec, pl.BlockSpec((Rt, St), lambda i, j: (i, j))],
        out_specs=pl.BlockSpec((Rt, St), lambda i, j: (i, j)),
        compiler_params=pltpu.CompilerParams(
            # Pure elementwise multiply, no reduction axis: both grid axes are
            # parallel so v7x's megacore can split whichever axis has extent >= 2.
            dimension_semantics=("parallel", "parallel"),
            vmem_limit_bytes=vmem_limit,
        ),
        cost_estimate=cost,
    )(mask2d_f32, act2d)


# ----------------------------------------------------------------------------
# SuperMask.forward equivalent
# ----------------------------------------------------------------------------
def supermask_forward(activation, logits_dict, domain_list, domain,
                      mode="sample", conv_mode=False, seed=0,
                      min_pallas_bytes=1 << 20):
    """JAX/Pallas equivalent of SuperMask.forward.

    Returns (masked_activation, mask, soft_mask) exactly like the torch module
    (forward values only; the straight-through estimator only changes gradients).
    """
    sel_logits = jnp.stack([logits_dict[d] for d in domain])            # (B, C)
    probs = jax.nn.sigmoid(sel_logits.astype(jnp.float32))              # soft mask (B, C)

    if mode == "sample":
        # TODO(synk): torch draws from a stateful global RNG; here the Bernoulli
        # sample is a pure function of `seed` (same seed => same mask).
        key = jax.random.PRNGKey(seed)
        hard = jax.random.bernoulli(key, probs).astype(jnp.float32)
        mask, soft, apply_mask = hard, probs, hard                      # STE forward == hard
    elif mode == "greedy":
        hard = (probs > 0.5).astype(jnp.float32)
        mask, soft, apply_mask = hard, probs, hard
    elif mode == "softscale":
        hard = (probs > 0.5).astype(jnp.float32)
        mask, soft, apply_mask = hard, probs, probs
    elif mode == "avg_mask_softscale":
        all_logits = jnp.stack([logits_dict[d] for d in domain_list])   # (D, C)
        mean_probs = jnp.mean(jax.nn.sigmoid(all_logits.astype(jnp.float32)), axis=0)
        soft = jnp.broadcast_to(mean_probs[None, :], probs.shape)       # (B, C)
        hard = (soft > 0.5).astype(jnp.float32)
        mask, apply_mask = hard, soft
    else:
        raise ValueError(f"unknown mode {mode}")

    B, C = probs.shape
    apply_f32 = apply_mask.astype(jnp.float32)
    act_bytes = activation.size * jnp.dtype(activation.dtype).itemsize

    if conv_mode and activation.ndim > 2:
        orig_shape = activation.shape
        act2 = activation.reshape(B * C, -1)        # (B*C, H*W): spatial on lane axis
        S = act2.shape[1]
        if act_bytes < min_pallas_bytes or S < 128:
            # Tiny or narrow-lane (e.g. 7x7) maps: launch/step cost and masked
            # partial stores would dominate a Pallas kernel; let XLA fuse it.
            bshape = (B, C) + (1,) * (activation.ndim - 2)
            out = (activation.astype(jnp.float32)
                   * apply_f32.reshape(bshape)).astype(activation.dtype)
        else:
            out = _masked_multiply(act2, apply_f32.reshape(B * C, 1)).reshape(orig_shape)
    else:
        orig_shape = activation.shape
        act2 = activation.reshape(B, C)
        if act_bytes < min_pallas_bytes or C < 128:
            out = (act2.astype(jnp.float32) * apply_f32).astype(activation.dtype)
            out = out.reshape(orig_shape)
        else:
            out = _masked_multiply(act2, apply_f32).reshape(orig_shape)

    return out, mask, soft


# ----------------------------------------------------------------------------
# Demo / self-test
# ----------------------------------------------------------------------------
if __name__ == "__main__":
    key = jax.random.PRNGKey(0)
    B, C, H, W = 2, 4, 16, 16                      # act_size == C == 4
    domain_list = ["d0", "d1", "d2"]
    domain = ["d0", "d2"]                          # one domain per batch sample

    k_act, k_big, *k_logits = jax.random.split(key, 2 + len(domain_list))
    # init_setting='random_uniform': torch.rand(act_size) -> uniform [0, 1)
    logits_dict = {d: jax.random.uniform(k, (C,), dtype=jnp.float32)
                   for d, k in zip(domain_list, k_logits)}
    activation = jax.random.normal(k_act, (B, C, H, W), dtype=jnp.float32)

    probs_ref = jax.nn.sigmoid(jnp.stack([logits_dict[d] for d in domain]))
    hard_ref = (probs_ref > 0.5).astype(jnp.float32)

    # --- mode='sample' (default): Bernoulli hard mask ------------------------
    out_s, mask_s, soft_s = supermask_forward(
        activation, logits_dict, domain_list, domain,
        mode="sample", conv_mode=True, seed=0)
    jax.block_until_ready((out_s, mask_s, soft_s))
    assert jnp.allclose(out_s, activation * mask_s[:, :, None, None])
    assert jnp.allclose(soft_s, probs_ref)
    assert jnp.all((mask_s == 0.0) | (mask_s == 1.0))

    # --- mode='greedy': fully deterministic, check against pure-JAX ref ------
    out_g, mask_g, soft_g = supermask_forward(
        activation, logits_dict, domain_list, domain,
        mode="greedy", conv_mode=True)
    jax.block_until_ready((out_g, mask_g, soft_g))
    assert jnp.allclose(out_g, activation * hard_ref[:, :, None, None])
    assert jnp.allclose(mask_g, hard_ref)
    assert jnp.allclose(soft_g, probs_ref)

    # --- mode='softscale' on a 2-D (non-conv) activation ----------------------
    act2d = jax.random.normal(jax.random.PRNGKey(1), (B, C), dtype=jnp.float32)
    out_ss, mask_ss, soft_ss = supermask_forward(
        act2d, logits_dict, domain_list, domain, mode="softscale", conv_mode=False)
    jax.block_until_ready((out_ss, mask_ss, soft_ss))
    assert jnp.allclose(out_ss, act2d * probs_ref, rtol=1e-6, atol=1e-6)
    assert jnp.allclose(mask_ss, hard_ref)
    assert jnp.allclose(soft_ss, probs_ref)

    # --- mode='avg_mask_softscale' --------------------------------------------
    out_a, mask_a, soft_a = supermask_forward(
        activation, logits_dict, domain_list, domain,
        mode="avg_mask_softscale", conv_mode=True)
    jax.block_until_ready((out_a, mask_a, soft_a))
    mean_ref = jnp.mean(jax.nn.sigmoid(jnp.stack([logits_dict[d] for d in domain_list])),
                        axis=0)
    soft_ref_a = jnp.broadcast_to(mean_ref[None, :], (B, C))
    assert jnp.allclose(out_a, activation * soft_ref_a[:, :, None, None],
                        rtol=1e-6, atol=1e-6)
    assert jnp.allclose(mask_a, (soft_ref_a > 0.5).astype(jnp.float32))
    assert jnp.allclose(soft_a, soft_ref_a)

    # --- Larger conv activation: exercises the tiled Pallas path --------------
    B2, C2, H2, W2 = 4, 8, 128, 128               # 2 MiB f32 -> above Pallas threshold
    k_big_act, k_bl0, k_bl1, k_bl2 = jax.random.split(k_big, 4)
    logits_big = {"d0": jax.random.uniform(k_bl0, (C2,), dtype=jnp.float32),
                  "d1": jax.random.uniform(k_bl1, (C2,), dtype=jnp.float32),
                  "d2": jax.random.uniform(k_bl2, (C2,), dtype=jnp.float32)}
    domain_big = ["d1", "d2", "d0", "d1"]          # one per batch sample
    act_big = jax.random.normal(k_big_act, (B2, C2, H2, W2), dtype=jnp.float32)
    probs_big = jax.nn.sigmoid(jnp.stack([logits_big[d] for d in domain_big]))
    hard_big = (probs_big > 0.5).astype(jnp.float32)

    out_b, mask_b, soft_b = supermask_forward(
        act_big, logits_big, domain_list, domain_big, mode="greedy", conv_mode=True)
    jax.block_until_ready((out_b, mask_b, soft_b))
    assert jnp.allclose(out_b, act_big * hard_big[:, :, None, None])
    assert jnp.allclose(mask_b, hard_big)
    assert jnp.allclose(soft_b, probs_big)

    print("KERNEL_OK")
</pallas_src>

<mosaic_0001>
module attributes {stable_mosaic.version = 11 : i64} {
  func.func @_mask_mul_kernel(%arg0: i32, %arg1: i32, %arg2: memref<32x1xf32, #tpu.memory_space<vmem>>, %arg3: memref<32x16384xf32, #tpu.memory_space<vmem>>, %arg4: memref<32x16384xf32, #tpu.memory_space<vmem>>) attributes {dimension_semantics = [#tpu.dimension_semantics<parallel>, #tpu.dimension_semantics<parallel>], iteration_bounds = array<i64: 1, 1>, scalar_prefetch = 0 : i64, scratch_operands = 0 : i64, tpu.core_type = #tpu.core_type<tc>, window_params = [{transform_indices = @transform_0, window_bounds = array<i64: 32, 1>}, {transform_indices = @transform_1, window_bounds = array<i64: 32, 16384>}, {transform_indices = @transform_2, window_bounds = array<i64: 32, 16384>}]} {
    %c0 = arith.constant 0 : index
    %c0_0 = arith.constant 0 : index
    %0 = vector.load %arg3[%c0, %c0_0] : memref<32x16384xf32, #tpu.memory_space<vmem>>, vector<32x16384xf32>
    %c0_1 = arith.constant 0 : index
    %c0_2 = arith.constant 0 : index
    %1 = vector.load %arg2[%c0_1, %c0_2] : memref<32x1xf32, #tpu.memory_space<vmem>>, vector<32x1xf32>
    %2 = vector.broadcast %1 : vector<32x1xf32> to vector<32x16384xf32>
    %3 = arith.mulf %0, %2 : vector<32x16384xf32>
    %c0_3 = arith.constant 0 : index
    %c0_4 = arith.constant 0 : index
    %4 = vector.load %arg4[%c0_3, %c0_4] : memref<32x16384xf32, #tpu.memory_space<vmem>>, vector<32x16384xf32>
    tpu.vector_store %arg4[%c0_3, %c0_4], %3 {strides = array<i32>} : memref<32x16384xf32, #tpu.memory_space<vmem>>, vector<32x16384xf32>,
    return
  }
  func.func @transform_0(%arg0: i32, %arg1: i32) -> (i32, i32) {
    %c0_i32 = arith.constant 0 : i32
    %c0_i32_0 = arith.constant 0 : i32
    return %arg0, %c0_i32 : i32, i32
  }
  func.func @transform_1(%arg0: i32, %arg1: i32) -> (i32, i32) {
    %c0_i32 = arith.constant 0 : i32
    return %arg0, %arg1 : i32, i32
  }
  func.func @transform_2(%arg0: i32, %arg1: i32) -> (i32, i32) {
    %c0_i32 = arith.constant 0 : i32
    return %arg0, %arg1 : i32, i32
  }
}

</mosaic_0001>

<bundles_post_ra>
// kernel: tpu_custom_call.1
= control target key start
LH: loop header
LB: loop body
LE: loop exit
PB: predicated region body
PF: predicated region fallthrough
CT: control target
= control target key end

     0   :  { %7 = vsyncpa [#allocation3], 0  ;;  %s3572_s0 = inlined_call_operand.vmem [shape: f32[32,1], index: 0, kind: input, shape index: {}]   ;;  %s3573_s1 = inlined_call_operand.hbm [shape: f32[32,16384], index: 1, kind: input, shape index: {}]   ;;  %s3574_s2 = inlined_call_operand.hbm [shape: f32[32,16384], index: 2, kind: output, shape index: {}]  }
   0x1   :  { %8 = vsyncpa [#allocation4], 0  ;;  %s1658_s9 = smov [#allocation2]   ;;  %s1610_s13 = scalar_lea.hbm %s3573_s1, 65536 }
   0x2   :  { %s16_s10 = sshll.u32 %s1658_s9, 4  ;;  %p1611_p0 = scmp.ne.s32.totalorder %s3573_s1, %s1610_s13  ;;  %s17_s10 = int_to_ptr.vmem [resolvable:$true] %s16_s10 }
   0x3   :  { %p1614_p1 = scmp.lt.u32.totalorder %s1610_s13, %s3573_s1 }
   0x5   :  { %p1616_p2 = pnand %p1614_p1, %p1611_p0 }
   0x7   :  { %1619 = shalt.err (!%p1616_p2)
}
   0x8   :  { %s1620_s18 = scalar_lea.vmem %s17_s10, 65536  ;;  %p1625_p4 = scmp.lt.s32.totalorder %s17_s10, %s17_s10 }
   0x9   :  { %p1621_p3 = scmp.ne.s32.totalorder %s17_s10, %s1620_s18  ;;  %p1626_p5 = scmp.lt.s32.totalorder %s1620_s18, %s1620_s18 }
   0xb   :  { %p1627_p6 = por %p1626_p5, %p1625_p4 }
   0xd   :  { %p1628_p7 = pnand %p1627_p6, %p1621_p3 }
   0xf   :  { %1631 = shalt.err (!%p1628_p7)
}
  0x10   :  { %s1659_s19 = smov 16384   ;;  %s1660_s20 = smov 1024  }
  0x11   :  { %22 = dma.hbm_to_vmem [thread:$0]  %s3573_s1, 65536, %s17_s10, [#allocation3], %s1659_s19, %s1659_s19, %s1660_s20  }
  0x12   :  { %1654 = dma.done.wait [#allocation3], 65536  }
  0x13   :  { %1655 = vsyncadd [#allocation3], 4294901760  ;;  %v1661_v0 = vmov 0   ;;  %v540_v1 = vld [vmem:[%s3572_s0 + $0x10] sm:$0xff]  ;;  %v538_v2 = vld [vmem:[%s3572_s0] sm:$0xff] }
  0x14   :  { %1609 = vset.pattern.permute.xlu1 %v1661_v0  ;;  %1608 = vset.pattern.permute.xlu0 %v1661_v0  ;;  %v541_v3 = vld [vmem:[%s3572_s0 + $0x18] sm:$0xff]  ;;  %v539_v4 = vld [vmem:[%s3572_s0 + $0x8] sm:$0xff]  ;;  %v26_v5 = vld [vmem:[#allocation2] sm:$0xff]  ;;  %s1662_s0 = smov [#allocation5]  }
  0x15   :  { %554 = vperm.xlu1 %1609, %v540_v1   ;;  %544 = vperm.xlu0 %1608, %v538_v2   ;;  %v27_v6 = vld [vmem:[#allocation2 + $0x8] sm:$0xff]  ;;  %v28_v7 = vld [vmem:[#allocation2 + $0x10] sm:$0xff]  ;;  %v29_v8 = vld [vmem:[#allocation2 + $0x18] sm:$0xff]  ;;  %s1591_s30 = sshll.u32 %s1662_s0, 4  ;;  %s1592_s30 = int_to_ptr.vmem [resolvable:$true] %s1591_s30 }
  0x16   :  { %v30_v9 = vld [vmem:[#allocation2 + $0x20] sm:$0xff]  ;;  %v31_v10 = vld [vmem:[#allocation2 + $0x28] sm:$0xff]  ;;  %v32_v11 = vld [vmem:[#allocation2 + $0x30] sm:$0xff]  ;;  %s1632_s3 = scalar_lea.vmem %s1592_s30, 65536  ;;  %p1637_p9 = scmp.lt.s32.totalorder %s1592_s30, %s1592_s30 }
  0x17   :  { %v33_v12 = vld [vmem:[#allocation2 + $0x38] sm:$0xff]  ;;  %v34_v13 = vld [vmem:[#allocation2 + $0x40] sm:$0xff]  ;;  %v35_v14 = vld [vmem:[#allocation2 + $0x48] sm:$0xff]  ;;  %p1633_p8 = scmp.ne.s32.totalorder %s1592_s30, %s1632_s3  ;;  %p1638_p10 = scmp.lt.s32.totalorder %s1632_s3, %s1632_s3 }
  0x18   :  { %v36_v15 = vld [vmem:[#allocation2 + $0x50] sm:$0xff]  ;;  %v37_v16 = vld [vmem:[#allocation2 + $0x58] sm:$0xff]  ;;  %v38_v17 = vld [vmem:[#allocation2 + $0x60] sm:$0xff] }
  0x19   :  { %559 = vperm.xlu1 %1609, %v541_v3   ;;  %549 = vperm.xlu0 %1608, %v539_v4   ;;  %v39_v18 = vld [vmem:[#allocation2 + $0x68] sm:$0xff]  ;;  %v40_v19 = vld [vmem:[#allocation2 + $0x70] sm:$0xff]  ;;  %v41_v20 = vld [vmem:[#allocation2 + $0x78] sm:$0xff]  ;;  %p1639_p11 = por %p1638_p10, %p1637_p9 }
  0x1a   :  { %v42_v22 = vld [vmem:[#allocation2 + $0x80] sm:$0xff]  ;;  %v43_v23 = vld [vmem:[#allocation2 + $0x88] sm:$0xff]  ;;  %v44_v24 = vld [vmem:[#allocation2 + $0x90] sm:$0xff] }
  0x1b   :  { %v45_v25 = vld [vmem:[#allocation2 + $0x98] sm:$0xff]  ;;  %v46_v26 = vld [vmem:[#allocation2 + $0xa0] sm:$0xff]  ;;  %v47_v27 = vld [vmem:[#allocation2 + $0xa8] sm:$0xff]  ;;  %p1640_p12 = pnand %p1639_p11, %p1633_p8 }
  0x1c   :  { %v48_v28 = vld [vmem:[#allocation2 + $0xb0] sm:$0xff]  ;;  %v49_v29 = vld [vmem:[#allocation2 + $0xb8] sm:$0xff]  ;;  %v50_v34 = vld [vmem:[#allocation2 + $0xc0] sm:$0xff] }
  0x1d   :  { %v51_v35 = vld [vmem:[#allocation2 + $0xc8] sm:$0xff]  ;;  %v52_v36 = vld [vmem:[#allocation2 + $0xd0] sm:$0xff]  ;;  %v53_v37 = vld [vmem:[#allocation2 + $0xd8] sm:$0xff] }
  0x1e   :  { %v1715_v42 = vld [vmem:[#allocation2 + $0xe0] sm:$0xff]  ;;  %v1717_v43 = vld [vmem:[#allocation2 + $0xe8] sm:$0xff]  ;;  %v1719_v44 = vld [vmem:[#allocation2 + $0xf0] sm:$0xff] }
  0x1f   :  { %v1721_v45 = vld [vmem:[#allocation2 + $0xf8] sm:$0xff]  ;;  %v1727_v50 = vld [vmem:[#allocation2 + $0x100] sm:$0xff]  ;;  %v1729_v51 = vld [vmem:[#allocation2 + $0x108] sm:$0xff] }
  0x20   :  { %v1731_v52 = vld [vmem:[#allocation2 + $0x110] sm:$0xff]  ;;  %v1733_v53 = vld [vmem:[#allocation2 + $0x118] sm:$0xff]  ;;  %v1739_v58 = vld [vmem:[#allocation2 + $0x120] sm:$0xff] }
  0x21   :  { %v1741_v59 = vld [vmem:[#allocation2 + $0x128] sm:$0xff]  ;;  %v1743_v60 = vld [vmem:[#allocation2 + $0x130] sm:$0xff]  ;;  %v1745_v61 = vld [vmem:[#allocation2 + $0x138] sm:$0xff] }
  0x22   :  { %v1751_v2 = vld [vmem:[#allocation2 + $0x140] sm:$0xff]  ;;  %v1753_v3 = vld [vmem:[#allocation2 + $0x148] sm:$0xff]  ;;  %v1755_v4 = vld [vmem:[#allocation2 + $0x150] sm:$0xff] }
  0x94   :  { %v1705_v21 = vpop.permute.xlu0 %544 }
  0x95   :  { %v562_v30 = vmul.f32 %v1705_v21, %v26_v5  ;;  %v563_v31 = vmul.f32 %v1705_v21, %v27_v6  ;;  %v564_v32 = vmul.f32 %v1705_v21, %v28_v7  ;;  %v565_v33 = vmul.f32 %v1705_v21, %v29_v8  ;;  %v1757_v5 = vld [vmem:[#allocation2 + $0x158] sm:$0xff] }
  0x96   :  { %v566_v38 = vmul.f32 %v1705_v21, %v30_v9  ;;  %v567_v39 = vmul.f32 %v1705_v21, %v31_v10  ;;  %v568_v40 = vmul.f32 %v1705_v21, %v32_v11  ;;  %v569_v41 = vmul.f32 %v1705_v21, %v33_v12  ;;  %v1763_v10 = vld [vmem:[#allocation2 + $0x160] sm:$0xff]  ;;  %v1765_v11 = vld [vmem:[#allocation2 + $0x168] sm:$0xff]  ;;  %v1767_v12 = vld [vmem:[#allocation2 + $0x170] sm:$0xff] }
  0x97   :  { %v570_v46 = vmul.f32 %v1705_v21, %v34_v13  ;;  %v571_v47 = vmul.f32 %v1705_v21, %v35_v14  ;;  %v572_v48 = vmul.f32 %v1705_v21, %v36_v15  ;;  %v573_v49 = vmul.f32 %v1705_v21, %v37_v16  ;;  %1074 = vst [vmem:[#allocation5] sm:$0xff] %v562_v30  ;;  %v1769_v13 = vld [vmem:[#allocation2 + $0x178] sm:$0xff] }
  0x98   :  { %1075 = vst [vmem:[#allocation5 + $0x8] sm:$0xff] %v563_v31  ;;  %1076 = vst [vmem:[#allocation5 + $0x10] sm:$0xff] %v564_v32  ;;  %v574_v54 = vmul.f32 %v1705_v21, %v38_v17  ;;  %v575_v55 = vmul.f32 %v1705_v21, %v39_v18  ;;  %v576_v56 = vmul.f32 %v1705_v21, %v40_v19  ;;  %v1775_v18 = vld [vmem:[#allocation2 + $0x180] sm:$0xff]  ;;  %v1777_v19 = vld [vmem:[#allocation2 + $0x188] sm:$0xff] }
  0x99   :  { %1077 = vst [vmem:[#allocation5 + $0x18] sm:$0xff] %v565_v33  ;;  %v577_v57 = vmul.f32 %v1705_v21, %v41_v20  ;;  %1078 = vst [vmem:[#allocation5 + $0x20] sm:$0xff] %v566_v38  ;;  %v578_v62 = vmul.f32 %v1705_v21, %v42_v22  ;;  %v579_v63 = vmul.f32 %v1705_v21, %v43_v23  ;;  %v1779_v20 = vld [vmem:[#allocation2 + $0x190] sm:$0xff]  ;;  %v1781_v22 = vld [vmem:[#allocation2 + $0x198] sm:$0xff] }
  0x9a   :  { %1079 = vst [vmem:[#allocation5 + $0x28] sm:$0xff] %v567_v39  ;;  %1080 = vst [vmem:[#allocation5 + $0x30] sm:$0xff] %v568_v40  ;;  %v580_v0 = vmul.f32 %v1705_v21, %v44_v24  ;;  %v581_v1 = vmul.f32 %v1705_v21, %v45_v25  ;;  %v582_v6 = vmul.f32 %v1705_v21, %v46_v26  ;;  %v1797_v30 = vld [vmem:[#allocation2 + $0x1b8] sm:$0xff] }
  0x9b   :  { %1081 = vst [vmem:[#allocation5 + $0x38] sm:$0xff] %v569_v41  ;;  %1082 = vst [vmem:[#allocation5 + $0x40] sm:$0xff] %v570_v46  ;;  %v583_v7 = vmul.f32 %v1705_v21, %v47_v27  ;;  %v584_v8 = vmul.f32 %v1705_v21, %v48_v28  ;;  %v585_v9 = vmul.f32 %v1705_v21, %v49_v29  ;;  %v1791_v27 = vld [vmem:[#allocation2 + $0x1a0] sm:$0xff]  ;;  %v1793_v28 = vld [vmem:[#allocation2 + $0x1a8] sm:$0xff] }
  0x9c   :  { %1083 = vst [vmem:[#allocation5 + $0x48] sm:$0xff] %v571_v47  ;;  %1084 = vst [vmem:[#allocation5 + $0x50] sm:$0xff] %v572_v48  ;;  %v586_v14 = vmul.f32 %v1705_v21, %v50_v34  ;;  %v587_v15 = vmul.f32 %v1705_v21, %v51_v35  ;;  %v588_v16 = vmul.f32 %v1705_v21, %v52_v36  ;;  %v1795_v29 = vld [vmem:[#allocation2 + $0x1b0] sm:$0xff]  ;;  %v1807_v35 = vld [vmem:[#allocation2 + $0x1c0] sm:$0xff] }
  0x9d   :  { %1085 = vst [vmem:[#allocation5 + $0x58] sm:$0xff] %v573_v49  ;;  %1086 = vst [vmem:[#allocation5 + $0x60] sm:$0xff] %v574_v54  ;;  %v589_v17 = vmul.f32 %v1705_v21, %v53_v37  ;;  %v590_v23 = vmul.f32 %v1705_v21, %v1715_v42  ;;  %v591_v24 = vmul.f32 %v1705_v21, %v1717_v43  ;;  %v1809_v36 = vld [vmem:[#allocation2 + $0x1c8] sm:$0xff]  ;;  %v1811_v37 = vld [vmem:[#allocation2 + $0x1d0] sm:$0xff] }
  0x9e   :  { %1087 = vst [vmem:[#allocation5 + $0x68] sm:$0xff] %v575_v55  ;;  %1088 = vst [vmem:[#allocation5 + $0x70] sm:$0xff] %v576_v56  ;;  %v592_v25 = vmul.f32 %v1705_v21, %v1719_v44  ;;  %v593_v26 = vmul.f32 %v1705_v21, %v1721_v45  ;;  %v594_v31 = vmul.f32 %v1705_v21, %v1727_v50  ;;  %v1813_v38 = vld [vmem:[#allocation2 + $0x1d8] sm:$0xff]  ;;  %v1823_v43 = vld [vmem:[#allocation2 + $0x1e0] sm:$0xff] }
  0x9f   :  { %1089 = vst [vmem:[#allocation5 + $0x78] sm:$0xff] %v577_v57  ;;  %1090 = vst [vmem:[#allocation5 + $0x80] sm:$0xff] %v578_v62  ;;  %v595_v32 = vmul.f32 %v1705_v21, %v1729_v51  ;;  %v596_v33 = vmul.f32 %v1705_v21, %v1731_v52  ;;  %v597_v34 = vmul.f32 %v1705_v21, %v1733_v53  ;;  %v1825_v44 = vld [vmem:[#allocation2 + $0x1e8] sm:$0xff]  ;;  %v1827_v45 = vld [vmem:[#allocation2 + $0x1f0] sm:$0xff] }
  0xa0   :  { %1091 = vst [vmem:[#allocation5 + $0x88] sm:$0xff] %v579_v63  ;;  %1092 = vst [vmem:[#allocation5 + $0x90] sm:$0xff] %v580_v0  ;;  %v598_v39 = vmul.f32 %v1705_v21, %v1739_v58  ;;  %v599_v40 = vmul.f32 %v1705_v21, %v1741_v59  ;;  %v600_v41 = vmul.f32 %v1705_v21, %v1743_v60  ;;  %v1829_v46 = vld [vmem:[#allocation2 + $0x1f8] sm:$0xff]  ;;  %v1839_v51 = vld [vmem:[#allocation2 + $0x200] sm:$0xff] }
  0xa1   :  { %1093 = vst [vmem:[#allocation5 + $0x98] sm:$0xff] %v581_v1  ;;  %1094 = vst [vmem:[#allocation5 + $0xa0] sm:$0xff] %v582_v6  ;;  %v601_v42 = vmul.f32 %v1705_v21, %v1745_v61  ;;  %v602_v47 = vmul.f32 %v1705_v21, %v1751_v2  ;;  %v603_v48 = vmul.f32 %v1705_v21, %v1753_v3  ;;  %v1841_v52 = vld [vmem:[#allocation2 + $0x208] sm:$0xff]  ;;  %v1843_v53 = vld [vmem:[#allocation2 + $0x210] sm:$0xff] }
  0xa2   :  { %1095 = vst [vmem:[#allocation5 + $0xa8] sm:$0xff] %v583_v7  ;;  %1096 = vst [vmem:[#allocation5 + $0xb0] sm:$0xff] %v584_v8  ;;  %v604_v49 = vmul.f32 %v1705_v21, %v1755_v4  ;;  %v605_v50 = vmul.f32 %v1705_v21, %v1757_v5  ;;  %v1845_v54 = vld [vmem:[#allocation2 + $0x218] sm:$0xff]  ;;  %v606_v55 = vmul.f32 %v1705_v21, %v1763_v10  ;;  %v1855_v59 = vld [vmem:[#allocation2 + $0x220] sm:$0xff] }
  0xa3   :  { %1097 = vst [vmem:[#allocation5 + $0xb8] sm:$0xff] %v585_v9  ;;  %1098 = vst [vmem:[#allocation5 + $0xc0] sm:$0xff] %v586_v14  ;;  %v607_v56 = vmul.f32 %v1705_v21, %v1765_v11  ;;  %v608_v57 = vmul.f32 %v1705_v21, %v1767_v12  ;;  %v609_v58 = vmul.f32 %v1705_v21, %v1769_v13  ;;  %v1857_v60 = vld [vmem:[#allocation2 + $0x228] sm:$0xff]  ;;  %v1859_v61 = vld [vmem:[#allocation2 + $0x230] sm:$0xff] }
  0xa4   :  { %1099 = vst [vmem:[#allocation5 + $0xc8] sm:$0xff] %v587_v15  ;;  %1100 = vst [vmem:[#allocation5 + $0xd0] sm:$0xff] %v588_v16  ;;  %v1861_v62 = vld [vmem:[#allocation2 + $0x238] sm:$0xff]  ;;  %v610_v63 = vmul.f32 %v1705_v21, %v1775_v18  ;;  %v611_v0 = vmul.f32 %v1705_v21, %v1777_v19  ;;  %v612_v1 = vmul.f32 %v1705_v21, %v1779_v20  ;;  %v1871_v3 = vld [vmem:[#allocation2 + $0x240] sm:$0xff] }
  0xa5   :  { %1101 = vst [vmem:[#allocation5 + $0xd8] sm:$0xff] %v589_v17  ;;  %1102 = vst [vmem:[#allocation5 + $0xe0] sm:$0xff] %v590_v23  ;;  %v613_v2 = vmul.f32 %v1705_v21, %v1781_v22  ;;  %v1873_v4 = vld [vmem:[#allocation2 + $0x248] sm:$0xff]  ;;  %v1875_v5 = vld [vmem:[#allocation2 + $0x250] sm:$0xff]  ;;  %v614_v7 = vmul.f32 %v1705_v21, %v1791_v27  ;;  %v615_v8 = vmul.f32 %v1705_v21, %v1793_v28 }
  0xa6   :  { %1103 = vst [vmem:[#allocation5 + $0xe8] sm:$0xff] %v591_v24  ;;  %1104 = vst [vmem:[#allocation5 + $0xf0] sm:$0xff] %v592_v25  ;;  %v1877_v6 = vld [vmem:[#allocation2 + $0x258] sm:$0xff]  ;;  %v616_v9 = vmul.f32 %v1705_v21, %v1795_v29  ;;  %v617_v10 = vmul.f32 %v1705_v21, %v1797_v30  ;;  %v1887_v11 = vld [vmem:[#allocation2 + $0x260] sm:$0xff]  ;;  %v618_v15 = vmul.f32 %v1705_v21, %v1807_v35 }
  0xa7   :  { %1105 = vst [vmem:[#allocation5 + $0xf8] sm:$0xff] %v593_v26  ;;  %1106 = vst [vmem:[#allocation5 + $0x100] sm:$0xff] %v594_v31  ;;  %v1889_v12 = vld [vmem:[#allocation2 + $0x268] sm:$0xff]  ;;  %v1891_v13 = vld [vmem:[#allocation2 + $0x270] sm:$0xff]  ;;  %v619_v16 = vmul.f32 %v1705_v21, %v1809_v36  ;;  %v620_v17 = vmul.f32 %v1705_v21, %v1811_v37  ;;  %v621_v18 = vmul.f32 %v1705_v21, %v1813_v38 }
  0xa8   :  { %1107 = vst [vmem:[#allocation5 + $0x108] sm:$0xff] %v595_v32  ;;  %1108 = vst [vmem:[#allocation5 + $0x110] sm:$0xff] %v596_v33  ;;  %v1893_v14 = vld [vmem:[#allocation2 + $0x278] sm:$0xff]  ;;  %v1903_v19 = vld [vmem:[#allocation2 + $0x280] sm:$0xff]  ;;  %v622_v24 = vmul.f32 %v1705_v21, %v1823_v43  ;;  %v623_v25 = vmul.f32 %v1705_v21, %v1825_v44  ;;  %v624_v26 = vmul.f32 %v1705_v21, %v1827_v45 }
  0xa9   :  { %1109 = vst [vmem:[#allocation5 + $0x118] sm:$0xff] %v597_v34  ;;  %1110 = vst [vmem:[#allocation5 + $0x120] sm:$0xff] %v598_v39  ;;  %v1905_v20 = vld [vmem:[#allocation2 + $0x288] sm:$0xff]  ;;  %v1907_v22 = vld [vmem:[#allocation2 + $0x290] sm:$0xff]  ;;  %v625_v27 = vmul.f32 %v1705_v21, %v1829_v46  ;;  %v626_v32 = vmul.f32 %v1705_v21, %v1839_v51  ;;  %v627_v33 = vmul.f32 %v1705_v21, %v1841_v52 }
  0xaa   :  { %1111 = vst [vmem:[#allocation5 + $0x128] sm:$0xff] %v599_v40  ;;  %1112 = vst [vmem:[#allocation5 + $0x130] sm:$0xff] %v600_v41  ;;  %v1909_v23 = vld [vmem:[#allocation2 + $0x298] sm:$0xff]  ;;  %v1919_v28 = vld [vmem:[#allocation2 + $0x2a0] sm:$0xff]  ;;  %v628_v34 = vmul.f32 %v1705_v21, %v1843_v53  ;;  %v629_v35 = vmul.f32 %v1705_v21, %v1845_v54  ;;  %v630_v40 = vmul.f32 %v1705_v21, %v1855_v59 }
  0xab   :  { %1113 = vst [vmem:[#allocation5 + $0x138] sm:$0xff] %v601_v42  ;;  %1114 = vst [vmem:[#allocation5 + $0x140] sm:$0xff] %v602_v47  ;;  %v1921_v29 = vld [vmem:[#allocation2 + $0x2a8] sm:$0xff]  ;;  %v1923_v30 = vld [vmem:[#allocation2 + $0x2b0] sm:$0xff]  ;;  %v631_v41 = vmul.f32 %v1705_v21, %v1857_v60  ;;  %v632_v42 = vmul.f32 %v1705_v21, %v1859_v61  ;;  %v633_v43 = vmul.f32 %v1705_v21, %v1861_v62 }
  0xac   :  { %1115 = vst [vmem:[#allocation5 + $0x148] sm:$0xff] %v603_v48  ;;  %1116 = vst [vmem:[#allocation5 + $0x150] sm:$0xff] %v604_v49  ;;  %v1925_v31 = vld [vmem:[#allocation2 + $0x2b8] sm:$0xff]  ;;  %v1935_v36 = vld [vmem:[#allocation2 + $0x2c0] sm:$0xff]  ;;  %v634_v48 = vmul.f32 %v1705_v21, %v1871_v3  ;;  %v635_v49 = vmul.f32 %v1705_v21, %v1873_v4  ;;  %v637_v51 = vmul.f32 %v1705_v21, %v1877_v6 }
  0xad   :  { %1117 = vst [vmem:[#allocation5 + $0x158] sm:$0xff] %v605_v50  ;;  %1118 = vst [vmem:[#allocation5 + $0x160] sm:$0xff] %v606_v55  ;;  %v1937_v37 = vld [vmem:[#allocation2 + $0x2c8] sm:$0xff]  ;;  %v1939_v38 = vld [vmem:[#allocation2 + $0x2d0] sm:$0xff]  ;;  %v636_v50 = vmul.f32 %v1705_v21, %v1875_v5  ;;  %v641_v59 = vmul.f32 %v1705_v21, %v1893_v14  ;;  %v645_v3 = vmul.f32 %v1705_v21, %v1909_v23 }
  0xae   :  { %1119 = vst [vmem:[#allocation5 + $0x168] sm:$0xff] %v607_v56  ;;  %1120 = vst [vmem:[#allocation5 + $0x170] sm:$0xff] %v608_v57  ;;  %v1941_v39 = vld [vmem:[#allocation2 + $0x2d8] sm:$0xff]  ;;  %v1951_v44 = vld [vmem:[#allocation2 + $0x2e0] sm:$0xff]  ;;  %v638_v56 = vmul.f32 %v1705_v21, %v1887_v11  ;;  %v639_v57 = vmul.f32 %v1705_v21, %v1889_v12  ;;  %v649_v11 = vmul.f32 %v1705_v21, %v1925_v31 }
  0xaf   :  { %1121 = vst [vmem:[#allocation5 + $0x178] sm:$0xff] %v609_v58  ;;  %1122 = vst [vmem:[#allocation5 + $0x180] sm:$0xff] %v610_v63  ;;  %v1953_v45 = vld [vmem:[#allocation2 + $0x2e8] sm:$0xff]  ;;  %v1955_v46 = vld [vmem:[#allocation2 + $0x2f0] sm:$0xff]  ;;  %v640_v58 = vmul.f32 %v1705_v21, %v1891_v13 }
  0xb0   :  { %1123 = vst [vmem:[#allocation5 + $0x188] sm:$0xff] %v611_v0  ;;  %1124 = vst [vmem:[#allocation5 + $0x190] sm:$0xff] %v612_v1  ;;  %v1957_v47 = vld [vmem:[#allocation2 + $0x2f8] sm:$0xff]  ;;  %v1967_v52 = vld [vmem:[#allocation2 + $0x300] sm:$0xff]  ;;  %v642_v0 = vmul.f32 %v1705_v21, %v1903_v19  ;;  %v643_v1 = vmul.f32 %v1705_v21, %v1905_v20  ;;  %v653_v19 = vmul.f32 %v1705_v21, %v1941_v39 }
  0xb1   :  { %1125 = vst [vmem:[#allocation5 + $0x198] sm:$0xff] %v613_v2  ;;  %1126 = vst [vmem:[#allocation5 + $0x1a0] sm:$0xff] %v614_v7  ;;  %v1969_v53 = vld [vmem:[#allocation2 + $0x308] sm:$0xff]  ;;  %v1971_v54 = vld [vmem:[#allocation2 + $0x310] sm:$0xff]  ;;  %v644_v2 = vmul.f32 %v1705_v21, %v1907_v22 }
  0xb2   :  { %1127 = vst [vmem:[#allocation5 + $0x1a8] sm:$0xff] %v615_v8  ;;  %1128 = vst [vmem:[#allocation5 + $0x1b0] sm:$0xff] %v616_v9  ;;  %v1973_v55 = vld [vmem:[#allocation2 + $0x318] sm:$0xff]  ;;  %v1983_v60 = vld [vmem:[#allocation2 + $0x320] sm:$0xff]  ;;  %v646_v8 = vmul.f32 %v1705_v21, %v1919_v28  ;;  %v647_v9 = vmul.f32 %v1705_v21, %v1921_v29  ;;  %v657_v28 = vmul.f32 %v1705_v21, %v1957_v47 }
  0xb3   :  { %1129 = vst [vmem:[#allocation5 + $0x1b8] sm:$0xff] %v617_v10  ;;  %1130 = vst [vmem:[#allocation5 + $0x1c0] sm:$0xff] %v618_v15  ;;  %v1985_v61 = vld [vmem:[#allocation2 + $0x328] sm:$0xff]  ;;  %v1987_v62 = vld [vmem:[#allocation2 + $0x330] sm:$0xff]  ;;  %v648_v10 = vmul.f32 %v1705_v21, %v1923_v30 }
  0xb4   :  { %1131 = vst [vmem:[#allocation5 + $0x1c8] sm:$0xff] %v619_v16  ;;  %1132 = vst [vmem:[#allocation5 + $0x1d0] sm:$0xff] %v620_v17  ;;  %v1989_v63 = vld [vmem:[#allocation2 + $0x338] sm:$0xff]  ;;  %v1999_v4 = vld [vmem:[#allocation2 + $0x340] sm:$0xff]  ;;  %v650_v16 = vmul.f32 %v1705_v21, %v1935_v36  ;;  %v651_v17 = vmul.f32 %v1705_v21, %v1937_v37  ;;  %v661_v36 = vmul.f32 %v1705_v21, %v1973_v55 }
  0xb5   :  { %1133 = vst [vmem:[#allocation5 + $0x1d8] sm:$0xff] %v621_v18  ;;  %1134 = vst [vmem:[#allocation5 + $0x1e0] sm:$0xff] %v622_v24  ;;  %v2001_v5 = vld [vmem:[#allocation2 + $0x348] sm:$0xff]  ;;  %v2003_v6 = vld [vmem:[#allocation2 + $0x350] sm:$0xff]  ;;  %v652_v18 = vmul.f32 %v1705_v21, %v1939_v38 }
  0xb6   :  { %1135 = vst [vmem:[#allocation5 + $0x1e8] sm:$0xff] %v623_v25  ;;  %1136 = vst [vmem:[#allocation5 + $0x1f0] sm:$0xff] %v624_v26  ;;  %v2005_v7 = vld [vmem:[#allocation2 + $0x358] sm:$0xff]  ;;  %v2015_v12 = vld [vmem:[#allocation2 + $0x360] sm:$0xff]  ;;  %v654_v25 = vmul.f32 %v1705_v21, %v1951_v44  ;;  %v655_v26 = vmul.f32 %v1705_v21, %v1953_v45  ;;  %v665_v44 = vmul.f32 %v1705_v21, %v1989_v63 }
  0xb7   :  { %1137 = vst [vmem:[#allocation5 + $0x1f8] sm:$0xff] %v625_v27  ;;  %1138 = vst [vmem:[#allocation5 + $0x200] sm:$0xff] %v626_v32  ;;  %v2017_v13 = vld [vmem:[#allocation2 + $0x368] sm:$0xff]  ;;  %v2019_v14 = vld [vmem:[#allocation2 + $0x370] sm:$0xff]  ;;  %v656_v27 = vmul.f32 %v1705_v21, %v1955_v46 }
  0xb8   :  { %1139 = vst [vmem:[#allocation5 + $0x208] sm:$0xff] %v627_v33  ;;  %1140 = vst [vmem:[#allocation5 + $0x210] sm:$0xff] %v628_v34  ;;  %v2021_v15 = vld [vmem:[#allocation2 + $0x378] sm:$0xff]  ;;  %v2031_v20 = vld [vmem:[#allocation2 + $0x380] sm:$0xff]  ;;  %v658_v33 = vmul.f32 %v1705_v21, %v1967_v52  ;;  %v659_v34 = vmul.f32 %v1705_v21, %v1969_v53  ;;  %v669_v52 = vmul.f32 %v1705_v21, %v2005_v7 }
  0xb9   :  { %1141 = vst [vmem:[#allocation5 + $0x218] sm:$0xff] %v629_v35  ;;  %1142 = vst [vmem:[#allocation5 + $0x220] sm:$0xff] %v630_v40  ;;  %v2033_v22 = vld [vmem:[#allocation2 + $0x388] sm:$0xff]  ;;  %v2035_v23 = vld [vmem:[#allocation2 + $0x390] sm:$0xff]  ;;  %v660_v35 = vmul.f32 %v1705_v21, %v1971_v54 }
  0xba   :  { %1143 = vst [vmem:[#allocation5 + $0x228] sm:$0xff] %v631_v41  ;;  %1144 = vst [vmem:[#allocation5 + $0x230] sm:$0xff] %v632_v42  ;;  %v2037_v24 = vld [vmem:[#allocation2 + $0x398] sm:$0xff]  ;;  %v2047_v29 = vld [vmem:[#allocation2 + $0x3a0] sm:$0xff]  ;;  %v662_v41 = vmul.f32 %v1705_v21, %v1983_v60  ;;  %v663_v42 = vmul.f32 %v1705_v21, %v1985_v61  ;;  %v673_v60 = vmul.f32 %v1705_v21, %v2021_v15 }
  0xbb   :  { %1145 = vst [vmem:[#allocation5 + $0x238] sm:$0xff] %v633_v43  ;;  %1146 = vst [vmem:[#allocation5 + $0x240] sm:$0xff] %v634_v48  ;;  %v2049_v30 = vld [vmem:[#allocation2 + $0x3a8] sm:$0xff]  ;;  %v2051_v31 = vld [vmem:[#allocation2 + $0x3b0] sm:$0xff]  ;;  %v664_v43 = vmul.f32 %v1705_v21, %v1987_v62 }
  0xbc   :  { %1147 = vst [vmem:[#allocation5 + $0x248] sm:$0xff] %v635_v49  ;;  %1148 = vst [vmem:[#allocation5 + $0x250] sm:$0xff] %v636_v50  ;;  %v2053_v32 = vld [vmem:[#allocation2 + $0x3b8] sm:$0xff]  ;;  %v2063_v37 = vld [vmem:[#allocation2 + $0x3c0] sm:$0xff]  ;;  %v666_v49 = vmul.f32 %v1705_v21, %v1999_v4  ;;  %v667_v50 = vmul.f32 %v1705_v21, %v2001_v5  ;;  %v677_v4 = vmul.f32 %v1705_v21, %v2037_v24  ;;  %v2127_v5 = vpop.permute.xlu0 %549 }
  0xbd   :  { %1149 = vst [vmem:[#allocation5 + $0x258] sm:$0xff] %v637_v51  ;;  %1150 = vst [vmem:[#allocation5 + $0x260] sm:$0xff] %v638_v56  ;;  %v2065_v38 = vld [vmem:[#allocation2 + $0x3c8] sm:$0xff]  ;;  %v2067_v39 = vld [vmem:[#allocation2 + $0x3d0] sm:$0xff]  ;;  %v668_v51 = vmul.f32 %v1705_v21, %v2003_v6 }
  0xbe   :  { %1151 = vst [vmem:[#allocation5 + $0x268] sm:$0xff] %v639_v57  ;;  %1152 = vst [vmem:[#allocation5 + $0x270] sm:$0xff] %v640_v58  ;;  %v2069_v40 = vld [vmem:[#allocation2 + $0x3d8] sm:$0xff]  ;;  %v2079_v45 = vld [vmem:[#allocation2 + $0x3e0] sm:$0xff]  ;;  %v670_v57 = vmul.f32 %v1705_v21, %v2015_v12  ;;  %v671_v58 = vmul.f32 %v1705_v21, %v2017_v13  ;;  %v680_v12 = vmul.f32 %v1705_v21, %v2051_v31 }
  0xbf   :  { %1153 = vst [vmem:[#allocation5 + $0x278] sm:$0xff] %v641_v59  ;;  %1154 = vst [vmem:[#allocation5 + $0x280] sm:$0xff] %v642_v0  ;;  %v2081_v46 = vld [vmem:[#allocation2 + $0x3e8] sm:$0xff]  ;;  %v2083_v47 = vld [vmem:[#allocation2 + $0x3f0] sm:$0xff]  ;;  %v672_v59 = vmul.f32 %v1705_v21, %v2019_v14  ;;  %v681_v13 = vmul.f32 %v1705_v21, %v2053_v32 }
  0xc0   :  { %1155 = vst [vmem:[#allocation5 + $0x288] sm:$0xff] %v643_v1  ;;  %1156 = vst [vmem:[#allocation5 + $0x290] sm:$0xff] %v644_v2  ;;  %v2085_v48 = vld [vmem:[#allocation2 + $0x3f8] sm:$0xff]  ;;  %v2095_v53 = vld [vmem:[#allocation2 + $0x400] sm:$0xff]  ;;  %v674_v1 = vmul.f32 %v1705_v21, %v2031_v20  ;;  %v675_v2 = vmul.f32 %v1705_v21, %v2033_v22  ;;  %v684_v20 = vmul.f32 %v1705_v21, %v2067_v39 }
  0xc1   :  { %1157 = vst [vmem:[#allocation5 + $0x298] sm:$0xff] %v645_v3  ;;  %1158 = vst [vmem:[#allocation5 + $0x2a0] sm:$0xff] %v646_v8  ;;  %v2097_v54 = vld [vmem:[#allocation2 + $0x408] sm:$0xff]  ;;  %v2099_v55 = vld [vmem:[#allocation2 + $0x410] sm:$0xff]  ;;  %v676_v3 = vmul.f32 %v1705_v21, %v2035_v23  ;;  %v685_v22 = vmul.f32 %v1705_v21, %v2069_v40 }
  0xc2   :  { %1159 = vst [vmem:[#allocation5 + $0x2a8] sm:$0xff] %v647_v9  ;;  %1160 = vst [vmem:[#allocation5 + $0x2b0] sm:$0xff] %v648_v10  ;;  %v2101_v56 = vld [vmem:[#allocation2 + $0x418] sm:$0xff]  ;;  %v2111_v61 = vld [vmem:[#allocation2 + $0x420] sm:$0xff]  ;;  %v678_v10 = vmul.f32 %v1705_v21, %v2047_v29  ;;  %v688_v29 = vmul.f32 %v1705_v21, %v2083_v47 }
  0xc3   :  { %1161 = vst [vmem:[#allocation5 + $0x2b8] sm:$0xff] %v649_v11  ;;  %1162 = vst [vmem:[#allocation5 + $0x2c0] sm:$0xff] %v650_v16  ;;  %v2113_v62 = vld [vmem:[#allocation2 + $0x428] sm:$0xff]  ;;  %v2115_v63 = vld [vmem:[#allocation2 + $0x430] sm:$0xff]  ;;  %v679_v11 = vmul.f32 %v1705_v21, %v2049_v30  ;;  %v689_v30 = vmul.f32 %v1705_v21, %v2085_v48 }
  0xc4   :  { %1163 = vst [vmem:[#allocation5 + $0x2c8] sm:$0xff] %v651_v17  ;;  %1164 = vst [vmem:[#allocation5 + $0x2d0] sm:$0xff] %v652_v18  ;;  %v2117_v0 = vld [vmem:[#allocation2 + $0x438] sm:$0xff]  ;;  %v2129_v6 = vld [vmem:[#allocation2 + $0x440] sm:$0xff]  ;;  %v682_v18 = vmul.f32 %v1705_v21, %v2063_v37  ;;  %v693_v37 = vmul.f32 %v2127_v5, %v2101_v56 }
  0xc5   :  { %1165 = vst [vmem:[#allocation5 + $0x2d8] sm:$0xff] %v653_v19  ;;  %1166 = vst [vmem:[#allocation5 + $0x2e0] sm:$0xff] %v654_v25  ;;  %v2131_v7 = vld [vmem:[#allocation2 + $0x448] sm:$0xff]  ;;  %v2133_v8 = vld [vmem:[#allocation2 + $0x450] sm:$0xff]  ;;  %v683_v19 = vmul.f32 %v1705_v21, %v2065_v38 }
  0xc6   :  { %1167 = vst [vmem:[#allocation5 + $0x2e8] sm:$0xff] %v655_v26  ;;  %1168 = vst [vmem:[#allocation5 + $0x2f0] sm:$0xff] %v656_v27  ;;  %v2135_v9 = vld [vmem:[#allocation2 + $0x458] sm:$0xff]  ;;  %v2145_v14 = vld [vmem:[#allocation2 + $0x460] sm:$0xff]  ;;  %v686_v27 = vmul.f32 %v1705_v21, %v2079_v45  ;;  %v697_v45 = vmul.f32 %v2127_v5, %v2117_v0 }
  0xc7   :  { %1169 = vst [vmem:[#allocation5 + $0x2f8] sm:$0xff] %v657_v28  ;;  %1170 = vst [vmem:[#allocation5 + $0x300] sm:$0xff] %v658_v33  ;;  %v2147_v15 = vld [vmem:[#allocation2 + $0x468] sm:$0xff]  ;;  %v2149_v16 = vld [vmem:[#allocation2 + $0x470] sm:$0xff]  ;;  %v687_v28 = vmul.f32 %v1705_v21, %v2081_v46  ;;  %v692_v21 = vmul.f32 %v2127_v5, %v2099_v55 }
  0xc8   :  { %1171 = vst [vmem:[#allocation5 + $0x308] sm:$0xff] %v659_v34  ;;  %1172 = vst [vmem:[#allocation5 + $0x310] sm:$0xff] %v660_v35  ;;  %v2151_v17 = vld [vmem:[#allocation2 + $0x478] sm:$0xff]  ;;  %v2161_v23 = vld [vmem:[#allocation2 + $0x480] sm:$0xff]  ;;  %v690_v35 = vmul.f32 %v2127_v5, %v2095_v53  ;;  %v701_v53 = vmul.f32 %v2127_v5, %v2135_v9 }
  0xc9   :  { %1173 = vst [vmem:[#allocation5 + $0x318] sm:$0xff] %v661_v36  ;;  %1174 = vst [vmem:[#allocation5 + $0x320] sm:$0xff] %v662_v41  ;;  %v2163_v24 = vld [vmem:[#allocation2 + $0x488] sm:$0xff]  ;;  %v2165_v25 = vld [vmem:[#allocation2 + $0x490] sm:$0xff]  ;;  %v691_v36 = vmul.f32 %v2127_v5, %v2097_v54 }
  0xca   :  { %1175 = vst [vmem:[#allocation5 + $0x328] sm:$0xff] %v663_v42  ;;  %1176 = vst [vmem:[#allocation5 + $0x330] sm:$0xff] %v664_v43  ;;  %v2167_v26 = vld [vmem:[#allocation2 + $0x498] sm:$0xff]  ;;  %v2177_v31 = vld [vmem:[#allocation2 + $0x4a0] sm:$0xff]  ;;  %v694_v42 = vmul.f32 %v2127_v5, %v2111_v61  ;;  %v695_v43 = vmul.f32 %v2127_v5, %v2113_v62  ;;  %v705_v61 = vmul.f32 %v2127_v5, %v2151_v17 }
  0xcb   :  { %1177 = vst [vmem:[#allocation5 + $0x338] sm:$0xff] %v665_v44  ;;  %1178 = vst [vmem:[#allocation5 + $0x340] sm:$0xff] %v666_v49  ;;  %v2179_v32 = vld [vmem:[#allocation2 + $0x4a8] sm:$0xff]  ;;  %v2181_v33 = vld [vmem:[#allocation2 + $0x4b0] sm:$0xff]  ;;  %v696_v44 = vmul.f32 %v2127_v5, %v2115_v63 }
  0xcc   :  { %1179 = vst [vmem:[#allocation5 + $0x348] sm:$0xff] %v667_v50  ;;  %1180 = vst [vmem:[#allocation5 + $0x350] sm:$0xff] %v668_v51  ;;  %v2183_v34 = vld [vmem:[#allocation2 + $0x4b8] sm:$0xff]  ;;  %v2193_v38 = vld [vmem:[#allocation2 + $0x4c0] sm:$0xff]  ;;  %v698_v50 = vmul.f32 %v2127_v5, %v2129_v6  ;;  %v699_v51 = vmul.f32 %v2127_v5, %v2131_v7  ;;  %v709_v6 = vmul.f32 %v2127_v5, %v2167_v26 }
  0xcd   :  { %1181 = vst [vmem:[#allocation5 + $0x358] sm:$0xff] %v669_v52  ;;  %1182 = vst [vmem:[#allocation5 + $0x360] sm:$0xff] %v670_v57  ;;  %v2195_v39 = vld [vmem:[#allocation2 + $0x4c8] sm:$0xff]  ;;  %v2197_v40 = vld [vmem:[#allocation2 + $0x4d0] sm:$0xff]  ;;  %v700_v52 = vmul.f32 %v2127_v5, %v2133_v8 }
  0xce   :  { %1183 = vst [vmem:[#allocation5 + $0x368] sm:$0xff] %v671_v58  ;;  %1184 = vst [vmem:[#allocation5 + $0x370] sm:$0xff] %v672_v59  ;;  %v2199_v41 = vld [vmem:[#allocation2 + $0x4d8] sm:$0xff]  ;;  %v2209_v46 = vld [vmem:[#allocation2 + $0x4e0] sm:$0xff]  ;;  %v702_v58 = vmul.f32 %v2127_v5, %v2145_v14  ;;  %v703_v59 = vmul.f32 %v2127_v5, %v2147_v15  ;;  %v713_v14 = vmul.f32 %v2127_v5, %v2183_v34 }
  0xcf   :  { %1185 = vst [vmem:[#allocation5 + $0x378] sm:$0xff] %v673_v60  ;;  %1186 = vst [vmem:[#allocation5 + $0x380] sm:$0xff] %v674_v1  ;;  %v2211_v47 = vld [vmem:[#allocation2 + $0x4e8] sm:$0xff]  ;;  %v2213_v48 = vld [vmem:[#allocation2 + $0x4f0] sm:$0xff]  ;;  %v704_v60 = vmul.f32 %v2127_v5, %v2149_v16 }
  0xd0   :  { %1187 = vst [vmem:[#allocation5 + $0x388] sm:$0xff] %v675_v2  ;;  %1188 = vst [vmem:[#allocation5 + $0x390] sm:$0xff] %v676_v3  ;;  %v2215_v49 = vld [vmem:[#allocation2 + $0x4f8] sm:$0xff]  ;;  %v2225_v54 = vld [vmem:[#allocation2 + $0x500] sm:$0xff]  ;;  %v706_v2 = vmul.f32 %v2127_v5, %v2161_v23  ;;  %v707_v3 = vmul.f32 %v2127_v5, %v2163_v24  ;;  %v717_v23 = vmul.f32 %v2127_v5, %v2199_v41 }
  0xd1   :  { %1189 = vst [vmem:[#allocation5 + $0x398] sm:$0xff] %v677_v4  ;;  %1190 = vst [vmem:[#allocation5 + $0x3a0] sm:$0xff] %v678_v10  ;;  %v2227_v55 = vld [vmem:[#allocation2 + $0x508] sm:$0xff]  ;;  %v2229_v56 = vld [vmem:[#allocation2 + $0x510] sm:$0xff]  ;;  %v708_v4 = vmul.f32 %v2127_v5, %v2165_v25 }
  0xd2   :  { %1191 = vst [vmem:[#allocation5 + $0x3a8] sm:$0xff] %v679_v11  ;;  %1192 = vst [vmem:[#allocation5 + $0x3b0] sm:$0xff] %v680_v12  ;;  %v2231_v57 = vld [vmem:[#allocation2 + $0x518] sm:$0xff]  ;;  %v2241_v62 = vld [vmem:[#allocation2 + $0x520] sm:$0xff]  ;;  %v710_v11 = vmul.f32 %v2127_v5, %v2177_v31  ;;  %v711_v12 = vmul.f32 %v2127_v5, %v2179_v32  ;;  %v721_v31 = vmul.f32 %v2127_v5, %v2215_v49 }
  0xd3   :  { %1193 = vst [vmem:[#allocation5 + $0x3b8] sm:$0xff] %v681_v13  ;;  %1194 = vst [vmem:[#allocation5 + $0x3c0] sm:$0xff] %v682_v18  ;;  %v2243_v63 = vld [vmem:[#allocation2 + $0x528] sm:$0xff]  ;;  %v2245_v0 = vld [vmem:[#allocation2 + $0x530] sm:$0xff]  ;;  %v712_v13 = vmul.f32 %v2127_v5, %v2181_v33 }
  0xd4   :  { %1195 = vst [vmem:[#allocation5 + $0x3c8] sm:$0xff] %v683_v19  ;;  %1196 = vst [vmem:[#allocation5 + $0x3d0] sm:$0xff] %v684_v20  ;;  %v2247_v1 = vld [vmem:[#allocation2 + $0x538] sm:$0xff]  ;;  %v2257_v7 = vld [vmem:[#allocation2 + $0x540] sm:$0xff]  ;;  %v714_v19 = vmul.f32 %v2127_v5, %v2193_v38  ;;  %v715_v20 = vmul.f32 %v2127_v5, %v2195_v39  ;;  %v725_v38 = vmul.f32 %v2127_v5, %v2231_v57 }
  0xd5   :  { %1197 = vst [vmem:[#allocation5 + $0x3d8] sm:$0xff] %v685_v22  ;;  %1198 = vst [vmem:[#allocation5 + $0x3e0] sm:$0xff] %v686_v27  ;;  %v2259_v8 = vld [vmem:[#allocation2 + $0x548] sm:$0xff]  ;;  %v2261_v9 = vld [vmem:[#allocation2 + $0x550] sm:$0xff]  ;;  %v716_v22 = vmul.f32 %v2127_v5, %v2197_v40 }
  0xd6   :  { %1199 = vst [vmem:[#allocation5 + $0x3e8] sm:$0xff] %v687_v28  ;;  %1200 = vst [vmem:[#allocation5 + $0x3f0] sm:$0xff] %v688_v29  ;;  %v2263_v10 = vld [vmem:[#allocation2 + $0x558] sm:$0xff]  ;;  %v2273_v15 = vld [vmem:[#allocation2 + $0x560] sm:$0xff]  ;;  %v718_v28 = vmul.f32 %v2127_v5, %v2209_v46  ;;  %v719_v29 = vmul.f32 %v2127_v5, %v2211_v47  ;;  %v729_v46 = vmul.f32 %v2127_v5, %v2247_v1 }
  0xd7   :  { %1201 = vst [vmem:[#allocation5 + $0x3f8] sm:$0xff] %v689_v30  ;;  %1202 = vst [vmem:[#allocation5 + $0x400] sm:$0xff] %v690_v35  ;;  %v2275_v16 = vld [vmem:[#allocation2 + $0x568] sm:$0xff]  ;;  %v2277_v17 = vld [vmem:[#allocation2 + $0x570] sm:$0xff]  ;;  %v720_v30 = vmul.f32 %v2127_v5, %v2213_v48 }
  0xd8   :  { %1203 = vst [vmem:[#allocation5 + $0x408] sm:$0xff] %v691_v36  ;;  %1204 = vst [vmem:[#allocation5 + $0x410] sm:$0xff] %v692_v21  ;;  %v2279_v18 = vld [vmem:[#allocation2 + $0x578] sm:$0xff]  ;;  %v2289_v24 = vld [vmem:[#allocation2 + $0x580] sm:$0xff]  ;;  %v722_v36 = vmul.f32 %v2127_v5, %v2225_v54  ;;  %v723_v21 = vmul.f32 %v2127_v5, %v2227_v55  ;;  %v733_v54 = vmul.f32 %v2127_v5, %v2263_v10 }
  0xd9   :  { %1205 = vst [vmem:[#allocation5 + $0x418] sm:$0xff] %v693_v37  ;;  %1206 = vst [vmem:[#allocation5 + $0x420] sm:$0xff] %v694_v42  ;;  %v2291_v25 = vld [vmem:[#allocation2 + $0x588] sm:$0xff]  ;;  %v2293_v26 = vld [vmem:[#allocation2 + $0x590] sm:$0xff]  ;;  %v724_v37 = vmul.f32 %v2127_v5, %v2229_v56 }
  0xda   :  { %1207 = vst [vmem:[#allocation5 + $0x428] sm:$0xff] %v695_v43  ;;  %1208 = vst [vmem:[#allocation5 + $0x430] sm:$0xff] %v696_v44  ;;  %v2295_v27 = vld [vmem:[#allocation2 + $0x598] sm:$0xff]  ;;  %v2305_v32 = vld [vmem:[#allocation2 + $0x5a0] sm:$0xff]  ;;  %v726_v43 = vmul.f32 %v2127_v5, %v2241_v62  ;;  %v727_v44 = vmul.f32 %v2127_v5, %v2243_v63  ;;  %v737_v62 = vmul.f32 %v2127_v5, %v2279_v18 }
  0xdb   :  { %1209 = vst [vmem:[#allocation5 + $0x438] sm:$0xff] %v697_v45  ;;  %1210 = vst [vmem:[#allocation5 + $0x440] sm:$0xff] %v698_v50  ;;  %v2307_v33 = vld [vmem:[#allocation2 + $0x5a8] sm:$0xff]  ;;  %v2309_v34 = vld [vmem:[#allocation2 + $0x5b0] sm:$0xff]  ;;  %v728_v45 = vmul.f32 %v2127_v5, %v2245_v0 }
  0xdc   :  { %1211 = vst [vmem:[#allocation5 + $0x448] sm:$0xff] %v699_v51  ;;  %1212 = vst [vmem:[#allocation5 + $0x450] sm:$0xff] %v700_v52  ;;  %v2311_v35 = vld [vmem:[#allocation2 + $0x5b8] sm:$0xff]  ;;  %v2321_v39 = vld [vmem:[#allocation2 + $0x5c0] sm:$0xff]  ;;  %v730_v51 = vmul.f32 %v2127_v5, %v2257_v7  ;;  %v731_v52 = vmul.f32 %v2127_v5, %v2259_v8  ;;  %v741_v7 = vmul.f32 %v2127_v5, %v2295_v27 }
  0xdd   :  { %1213 = vst [vmem:[#allocation5 + $0x458] sm:$0xff] %v701_v53  ;;  %1214 = vst [vmem:[#allocation5 + $0x460] sm:$0xff] %v702_v58  ;;  %v2323_v40 = vld [vmem:[#allocation2 + $0x5c8] sm:$0xff]  ;;  %v2325_v41 = vld [vmem:[#allocation2 + $0x5d0] sm:$0xff]  ;;  %v732_v53 = vmul.f32 %v2127_v5, %v2261_v9 }
  0xde   :  { %1215 = vst [vmem:[#allocation5 + $0x468] sm:$0xff] %v703_v59  ;;  %1216 = vst [vmem:[#allocation5 + $0x470] sm:$0xff] %v704_v60  ;;  %v2327_v42 = vld [vmem:[#allocation2 + $0x5d8] sm:$0xff]  ;;  %v2337_v47 = vld [vmem:[#allocation2 + $0x5e0] sm:$0xff]  ;;  %v734_v59 = vmul.f32 %v2127_v5, %v2273_v15  ;;  %v735_v60 = vmul.f32 %v2127_v5, %v2275_v16  ;;  %v745_v15 = vmul.f32 %v2127_v5, %v2311_v35 }
  0xdf   :  { %1217 = vst [vmem:[#allocation5 + $0x478] sm:$0xff] %v705_v61  ;;  %1218 = vst [vmem:[#allocation5 + $0x480] sm:$0xff] %v706_v2  ;;  %v2339_v48 = vld [vmem:[#allocation2 + $0x5e8] sm:$0xff]  ;;  %v2341_v49 = vld [vmem:[#allocation2 + $0x5f0] sm:$0xff]  ;;  %v736_v61 = vmul.f32 %v2127_v5, %v2277_v17 }
  0xe0   :  { %1219 = vst [vmem:[#allocation5 + $0x488] sm:$0xff] %v707_v3  ;;  %1220 = vst [vmem:[#allocation5 + $0x490] sm:$0xff] %v708_v4  ;;  %v2343_v50 = vld [vmem:[#allocation2 + $0x5f8] sm:$0xff]  ;;  %v2353_v55 = vld [vmem:[#allocation2 + $0x600] sm:$0xff]  ;;  %v738_v3 = vmul.f32 %v2127_v5, %v2289_v24  ;;  %v739_v4 = vmul.f32 %v2127_v5, %v2291_v25  ;;  %v749_v24 = vmul.f32 %v2127_v5, %v2327_v42 }
  0xe1   :  { %1221 = vst [vmem:[#allocation5 + $0x498] sm:$0xff] %v709_v6  ;;  %1222 = vst [vmem:[#allocation5 + $0x4a0] sm:$0xff] %v710_v11  ;;  %v2355_v56 = vld [vmem:[#allocation2 + $0x608] sm:$0xff]  ;;  %v2357_v57 = vld [vmem:[#allocation2 + $0x610] sm:$0xff]  ;;  %v740_v6 = vmul.f32 %v2127_v5, %v2293_v26 }
  0xe2   :  { %1223 = vst [vmem:[#allocation5 + $0x4a8] sm:$0xff] %v711_v12  ;;  %1224 = vst [vmem:[#allocation5 + $0x4b0] sm:$0xff] %v712_v13  ;;  %v2359_v58 = vld [vmem:[#allocation2 + $0x618] sm:$0xff]  ;;  %v2369_v63 = vld [vmem:[#allocation2 + $0x620] sm:$0xff]  ;;  %v742_v12 = vmul.f32 %v2127_v5, %v2305_v32  ;;  %v743_v13 = vmul.f32 %v2127_v5, %v2307_v33  ;;  %v753_v32 = vmul.f32 %v2127_v5, %v2343_v50 }
  0xe3   :  { %1225 = vst [vmem:[#allocation5 + $0x4b8] sm:$0xff] %v713_v14  ;;  %1226 = vst [vmem:[#allocation5 + $0x4c0] sm:$0xff] %v714_v19  ;;  %v2371_v0 = vld [vmem:[#allocation2 + $0x628] sm:$0xff]  ;;  %v2373_v1 = vld [vmem:[#allocation2 + $0x630] sm:$0xff]  ;;  %v744_v14 = vmul.f32 %v2127_v5, %v2309_v34 }
  0xe4   :  { %1227 = vst [vmem:[#allocation5 + $0x4c8] sm:$0xff] %v715_v20  ;;  %1228 = vst [vmem:[#allocation5 + $0x4d0] sm:$0xff] %v716_v22  ;;  %v2375_v2 = vld [vmem:[#allocation2 + $0x638] sm:$0xff]  ;;  %v2385_v8 = vld [vmem:[#allocation2 + $0x640] sm:$0xff]  ;;  %v746_v20 = vmul.f32 %v2127_v5, %v2321_v39  ;;  %v747_v22 = vmul.f32 %v2127_v5, %v2323_v40  ;;  %v757_v39 = vmul.f32 %v2127_v5, %v2359_v58 }
  0xe5   :  { %1229 = vst [vmem:[#allocation5 + $0x4d8] sm:$0xff] %v717_v23  ;;  %1230 = vst [vmem:[#allocation5 + $0x4e0] sm:$0xff] %v718_v28  ;;  %v2387_v9 = vld [vmem:[#allocation2 + $0x648] sm:$0xff]  ;;  %v2389_v10 = vld [vmem:[#allocation2 + $0x650] sm:$0xff]  ;;  %v748_v23 = vmul.f32 %v2127_v5, %v2325_v41 }
  0xe6   :  { %1231 = vst [vmem:[#allocation5 + $0x4e8] sm:$0xff] %v719_v29  ;;  %1232 = vst [vmem:[#allocation5 + $0x4f0] sm:$0xff] %v720_v30  ;;  %v2391_v11 = vld [vmem:[#allocation2 + $0x658] sm:$0xff]  ;;  %v2401_v16 = vld [vmem:[#allocation2 + $0x660] sm:$0xff]  ;;  %v750_v29 = vmul.f32 %v2127_v5, %v2337_v47  ;;  %v751_v30 = vmul.f32 %v2127_v5, %v2339_v48  ;;  %v761_v47 = vmul.f32 %v2127_v5, %v2375_v2 }
  0xe7   :  { %1233 = vst [vmem:[#allocation5 + $0x4f8] sm:$0xff] %v721_v31  ;;  %1234 = vst [vmem:[#allocation5 + $0x500] sm:$0xff] %v722_v36  ;;  %v2403_v17 = vld [vmem:[#allocation2 + $0x668] sm:$0xff]  ;;  %v2405_v18 = vld [vmem:[#allocation2 + $0x670] sm:$0xff]  ;;  %v752_v31 = vmul.f32 %v2127_v5, %v2341_v49 }
  0xe8   :  { %1235 = vst [vmem:[#allocation5 + $0x508] sm:$0xff] %v723_v21  ;;  %1236 = vst [vmem:[#allocation5 + $0x510] sm:$0xff] %v724_v37  ;;  %v2407_v19 = vld [vmem:[#allocation2 + $0x678] sm:$0xff]  ;;  %v2417_v25 = vld [vmem:[#allocation2 + $0x680] sm:$0xff]  ;;  %v754_v21 = vmul.f32 %v2127_v5, %v2353_v55  ;;  %v755_v37 = vmul.f32 %v2127_v5, %v2355_v56  ;;  %v765_v55 = vmul.f32 %v2127_v5, %v2391_v11 }
  0xe9   :  { %1237 = vst [vmem:[#allocation5 + $0x518] sm:$0xff] %v725_v38  ;;  %1238 = vst [vmem:[#allocation5 + $0x520] sm:$0xff] %v726_v43  ;;  %v2419_v26 = vld [vmem:[#allocation2 + $0x688] sm:$0xff]  ;;  %v2421_v27 = vld [vmem:[#allocation2 + $0x690] sm:$0xff]  ;;  %v756_v38 = vmul.f32 %v2127_v5, %v2357_v57 }
  0xea   :  { %1239 = vst [vmem:[#allocation5 + $0x528] sm:$0xff] %v727_v44  ;;  %1240 = vst [vmem:[#allocation5 + $0x530] sm:$0xff] %v728_v45  ;;  %v2423_v28 = vld [vmem:[#allocation2 + $0x698] sm:$0xff]  ;;  %v2433_v33 = vld [vmem:[#allocation2 + $0x6a0] sm:$0xff]  ;;  %v758_v44 = vmul.f32 %v2127_v5, %v2369_v63  ;;  %v759_v45 = vmul.f32 %v2127_v5, %v2371_v0  ;;  %v769_v63 = vmul.f32 %v2127_v5, %v2407_v19 }
  0xeb   :  { %1241 = vst [vmem:[#allocation5 + $0x538] sm:$0xff] %v729_v46  ;;  %1242 = vst [vmem:[#allocation5 + $0x540] sm:$0xff] %v730_v51  ;;  %v2435_v34 = vld [vmem:[#allocation2 + $0x6a8] sm:$0xff]  ;;  %v2437_v35 = vld [vmem:[#allocation2 + $0x6b0] sm:$0xff]  ;;  %v760_v46 = vmul.f32 %v2127_v5, %v2373_v1 }
  0xec   :  { %1243 = vst [vmem:[#allocation5 + $0x548] sm:$0xff] %v731_v52  ;;  %1244 = vst [vmem:[#allocation5 + $0x550] sm:$0xff] %v732_v53  ;;  %v2439_v36 = vld [vmem:[#allocation2 + $0x6b8] sm:$0xff]  ;;  %v2449_v40 = vld [vmem:[#allocation2 + $0x6c0] sm:$0xff]  ;;  %v762_v52 = vmul.f32 %v2127_v5, %v2385_v8  ;;  %v763_v53 = vmul.f32 %v2127_v5, %v2387_v9  ;;  %v773_v8 = vmul.f32 %v2127_v5, %v2423_v28 }
  0xed   :  { %1245 = vst [vmem:[#allocation5 + $0x558] sm:$0xff] %v733_v54  ;;  %1246 = vst [vmem:[#allocation5 + $0x560] sm:$0xff] %v734_v59  ;;  %v2451_v41 = vld [vmem:[#allocation2 + $0x6c8] sm:$0xff]  ;;  %v2453_v42 = vld [vmem:[#allocation2 + $0x6d0] sm:$0xff]  ;;  %v764_v54 = vmul.f32 %v2127_v5, %v2389_v10 }
  0xee   :  { %1247 = vst [vmem:[#allocation5 + $0x568] sm:$0xff] %v735_v60  ;;  %1248 = vst [vmem:[#allocation5 + $0x570] sm:$0xff] %v736_v61  ;;  %v2455_v43 = vld [vmem:[#allocation2 + $0x6d8] sm:$0xff]  ;;  %v2465_v48 = vld [vmem:[#allocation2 + $0x6e0] sm:$0xff]  ;;  %v766_v60 = vmul.f32 %v2127_v5, %v2401_v16  ;;  %v767_v61 = vmul.f32 %v2127_v5, %v2403_v17  ;;  %v777_v16 = vmul.f32 %v2127_v5, %v2439_v36 }
  0xef   :  { %1249 = vst [vmem:[#allocation5 + $0x578] sm:$0xff] %v737_v62  ;;  %1250 = vst [vmem:[#allocation5 + $0x580] sm:$0xff] %v738_v3  ;;  %v2467_v49 = vld [vmem:[#allocation2 + $0x6e8] sm:$0xff]  ;;  %v2469_v50 = vld [vmem:[#allocation2 + $0x6f0] sm:$0xff]  ;;  %v768_v62 = vmul.f32 %v2127_v5, %v2405_v18 }
  0xf0   :  { %1251 = vst [vmem:[#allocation5 + $0x588] sm:$0xff] %v739_v4  ;;  %1252 = vst [vmem:[#allocation5 + $0x590] sm:$0xff] %v740_v6  ;;  %v2471_v51 = vld [vmem:[#allocation2 + $0x6f8] sm:$0xff]  ;;  %v2481_v56 = vld [vmem:[#allocation2 + $0x700] sm:$0xff]  ;;  %v770_v4 = vmul.f32 %v2127_v5, %v2417_v25  ;;  %v771_v6 = vmul.f32 %v2127_v5, %v2419_v26  ;;  %v781_v25 = vmul.f32 %v2127_v5, %v2455_v43 }
  0xf1   :  { %1253 = vst [vmem:[#allocation5 + $0x598] sm:$0xff] %v741_v7  ;;  %1254 = vst [vmem:[#allocation5 + $0x5a0] sm:$0xff] %v742_v12  ;;  %v2483_v57 = vld [vmem:[#allocation2 + $0x708] sm:$0xff]  ;;  %v2485_v58 = vld [vmem:[#allocation2 + $0x710] sm:$0xff]  ;;  %v772_v7 = vmul.f32 %v2127_v5, %v2421_v27 }
  0xf2   :  { %1255 = vst [vmem:[#allocation5 + $0x5a8] sm:$0xff] %v743_v13  ;;  %1256 = vst [vmem:[#allocation5 + $0x5b0] sm:$0xff] %v744_v14  ;;  %v2487_v59 = vld [vmem:[#allocation2 + $0x718] sm:$0xff]  ;;  %v2497_v0 = vld [vmem:[#allocation2 + $0x720] sm:$0xff]  ;;  %v774_v13 = vmul.f32 %v2127_v5, %v2433_v33  ;;  %v775_v14 = vmul.f32 %v2127_v5, %v2435_v34  ;;  %v785_v33 = vmul.f32 %v2127_v5, %v2471_v51 }
  0xf3   :  { %1257 = vst [vmem:[#allocation5 + $0x5b8] sm:$0xff] %v745_v15  ;;  %1258 = vst [vmem:[#allocation5 + $0x5c0] sm:$0xff] %v746_v20  ;;  %v2499_v1 = vld [vmem:[#allocation2 + $0x728] sm:$0xff]  ;;  %v2501_v2 = vld [vmem:[#allocation2 + $0x730] sm:$0xff]  ;;  %v776_v15 = vmul.f32 %v2127_v5, %v2437_v35 }
  0xf4   :  { %1259 = vst [vmem:[#allocation5 + $0x5c8] sm:$0xff] %v747_v22  ;;  %1260 = vst [vmem:[#allocation5 + $0x5d0] sm:$0xff] %v748_v23  ;;  %v2503_v3 = vld [vmem:[#allocation2 + $0x738] sm:$0xff]  ;;  %v2513_v9 = vld [vmem:[#allocation2 + $0x740] sm:$0xff]  ;;  %v778_v22 = vmul.f32 %v2127_v5, %v2449_v40  ;;  %v779_v23 = vmul.f32 %v2127_v5, %v2451_v41  ;;  %v789_v40 = vmul.f32 %v2127_v5, %v2487_v59 }
  0xf5   :  { %1261 = vst [vmem:[#allocation5 + $0x5d8] sm:$0xff] %v749_v24  ;;  %1262 = vst [vmem:[#allocation5 + $0x5e0] sm:$0xff] %v750_v29  ;;  %v2515_v10 = vld [vmem:[#allocation2 + $0x748] sm:$0xff]  ;;  %v2517_v11 = vld [vmem:[#allocation2 + $0x750] sm:$0xff]  ;;  %v780_v24 = vmul.f32 %v2127_v5, %v2453_v42 }
  0xf6   :  { %1263 = vst [vmem:[#allocation5 + $0x5e8] sm:$0xff] %v751_v30  ;;  %1264 = vst [vmem:[#allocation5 + $0x5f0] sm:$0xff] %v752_v31  ;;  %v2519_v12 = vld [vmem:[#allocation2 + $0x758] sm:$0xff]  ;;  %v2529_v17 = vld [vmem:[#allocation2 + $0x760] sm:$0xff]  ;;  %v782_v30 = vmul.f32 %v2127_v5, %v2465_v48  ;;  %v783_v31 = vmul.f32 %v2127_v5, %v2467_v49  ;;  %v793_v48 = vmul.f32 %v2127_v5, %v2503_v3 }
  0xf7   :  { %1265 = vst [vmem:[#allocation5 + $0x5f8] sm:$0xff] %v753_v32  ;;  %1266 = vst [vmem:[#allocation5 + $0x600] sm:$0xff] %v754_v21  ;;  %v2531_v18 = vld [vmem:[#allocation2 + $0x768] sm:$0xff]  ;;  %v2533_v19 = vld [vmem:[#allocation2 + $0x770] sm:$0xff]  ;;  %v784_v32 = vmul.f32 %v2127_v5, %v2469_v50 }
  0xf8   :  { %1267 = vst [vmem:[#allocation5 + $0x608] sm:$0xff] %v755_v37  ;;  %1268 = vst [vmem:[#allocation5 + $0x610] sm:$0xff] %v756_v38  ;;  %v2535_v20 = vld [vmem:[#allocation2 + $0x778] sm:$0xff]  ;;  %v2545_v26 = vld [vmem:[#allocation2 + $0x780] sm:$0xff]  ;;  %v786_v37 = vmul.f32 %v2127_v5, %v2481_v56  ;;  %v787_v38 = vmul.f32 %v2127_v5, %v2483_v57  ;;  %v797_v56 = vmul.f32 %v2127_v5, %v2519_v12 }
  0xf9   :  { %1269 = vst [vmem:[#allocation5 + $0x618] sm:$0xff] %v757_v39  ;;  %1270 = vst [vmem:[#allocation5 + $0x620] sm:$0xff] %v758_v44  ;;  %v2547_v27 = vld [vmem:[#allocation2 + $0x788] sm:$0xff]  ;;  %v2549_v28 = vld [vmem:[#allocation2 + $0x790] sm:$0xff]  ;;  %v788_v39 = vmul.f32 %v2127_v5, %v2485_v58 }
  0xfa   :  { %1271 = vst [vmem:[#allocation5 + $0x628] sm:$0xff] %v759_v45  ;;  %1272 = vst [vmem:[#allocation5 + $0x630] sm:$0xff] %v760_v46  ;;  %v2551_v29 = vld [vmem:[#allocation2 + $0x798] sm:$0xff]  ;;  %v2561_v34 = vld [vmem:[#allocation2 + $0x7a0] sm:$0xff]  ;;  %v790_v45 = vmul.f32 %v2127_v5, %v2497_v0  ;;  %v791_v46 = vmul.f32 %v2127_v5, %v2499_v1  ;;  %v801_v0 = vmul.f32 %v2127_v5, %v2535_v20 }
  0xfb   :  { %1273 = vst [vmem:[#allocation5 + $0x638] sm:$0xff] %v761_v47  ;;  %1274 = vst [vmem:[#allocation5 + $0x640] sm:$0xff] %v762_v52  ;;  %v2563_v35 = vld [vmem:[#allocation2 + $0x7a8] sm:$0xff]  ;;  %v2565_v36 = vld [vmem:[#allocation2 + $0x7b0] sm:$0xff]  ;;  %v792_v47 = vmul.f32 %v2127_v5, %v2501_v2 }
  0xfc   :  { %1275 = vst [vmem:[#allocation5 + $0x648] sm:$0xff] %v763_v53  ;;  %1276 = vst [vmem:[#allocation5 + $0x650] sm:$0xff] %v764_v54  ;;  %v2567_v21 = vld [vmem:[#allocation2 + $0x7b8] sm:$0xff]  ;;  %v2577_v41 = vld [vmem:[#allocation2 + $0x7c0] sm:$0xff]  ;;  %v794_v53 = vmul.f32 %v2127_v5, %v2513_v9  ;;  %v795_v54 = vmul.f32 %v2127_v5, %v2515_v10  ;;  %v805_v9 = vmul.f32 %v2127_v5, %v2551_v29  ;;  %v2641_v10 = vpop.permute.xlu1 %554 }
  0xfd   :  { %1277 = vst [vmem:[#allocation5 + $0x658] sm:$0xff] %v765_v55  ;;  %1278 = vst [vmem:[#allocation5 + $0x660] sm:$0xff] %v766_v60  ;;  %v2579_v42 = vld [vmem:[#allocation2 + $0x7c8] sm:$0xff]  ;;  %v2581_v43 = vld [vmem:[#allocation2 + $0x7d0] sm:$0xff]  ;;  %v796_v55 = vmul.f32 %v2127_v5, %v2517_v11 }
  0xfe   :  { %1279 = vst [vmem:[#allocation5 + $0x668] sm:$0xff] %v767_v61  ;;  %1280 = vst [vmem:[#allocation5 + $0x670] sm:$0xff] %v768_v62  ;;  %v2583_v44 = vld [vmem:[#allocation2 + $0x7d8] sm:$0xff]  ;;  %v2593_v49 = vld [vmem:[#allocation2 + $0x7e0] sm:$0xff]  ;;  %v798_v61 = vmul.f32 %v2127_v5, %v2529_v17  ;;  %v799_v62 = vmul.f32 %v2127_v5, %v2531_v18  ;;  %v808_v17 = vmul.f32 %v2127_v5, %v2565_v36 }
  0xff   :  { %1281 = vst [vmem:[#allocation5 + $0x678] sm:$0xff] %v769_v63  ;;  %1282 = vst [vmem:[#allocation5 + $0x680] sm:$0xff] %v770_v4  ;;  %v2595_v50 = vld [vmem:[#allocation2 + $0x7e8] sm:$0xff]  ;;  %v2597_v51 = vld [vmem:[#allocation2 + $0x7f0] sm:$0xff]  ;;  %v800_v63 = vmul.f32 %v2127_v5, %v2533_v19  ;;  %v809_v18 = vmul.f32 %v2127_v5, %v2567_v21 }
 0x100   :  { %1283 = vst [vmem:[#allocation5 + $0x688] sm:$0xff] %v771_v6  ;;  %1284 = vst [vmem:[#allocation5 + $0x690] sm:$0xff] %v772_v7  ;;  %v2599_v52 = vld [vmem:[#allocation2 + $0x7f8] sm:$0xff]  ;;  %v2609_v57 = vld [vmem:[#allocation2 + $0x800] sm:$0xff]  ;;  %v802_v6 = vmul.f32 %v2127_v5, %v2545_v26  ;;  %v803_v7 = vmul.f32 %v2127_v5, %v2547_v27  ;;  %v812_v26 = vmul.f32 %v2127_v5, %v2581_v43 }
 0x101   :  { %1285 = vst [vmem:[#allocation5 + $0x698] sm:$0xff] %v773_v8  ;;  %1286 = vst [vmem:[#allocation5 + $0x6a0] sm:$0xff] %v774_v13  ;;  %v2611_v58 = vld [vmem:[#allocation2 + $0x808] sm:$0xff]  ;;  %v2613_v59 = vld [vmem:[#allocation2 + $0x810] sm:$0xff]  ;;  %v804_v8 = vmul.f32 %v2127_v5, %v2549_v28  ;;  %v813_v27 = vmul.f32 %v2127_v5, %v2583_v44 }
 0x102   :  { %1287 = vst [vmem:[#allocation5 + $0x6a8] sm:$0xff] %v775_v14  ;;  %1288 = vst [vmem:[#allocation5 + $0x6b0] sm:$0xff] %v776_v15  ;;  %v2615_v60 = vld [vmem:[#allocation2 + $0x818] sm:$0xff]  ;;  %v2625_v1 = vld [vmem:[#allocation2 + $0x820] sm:$0xff]  ;;  %v806_v15 = vmul.f32 %v2127_v5, %v2561_v34  ;;  %v816_v34 = vmul.f32 %v2127_v5, %v2597_v51 }
 0x103   :  { %1289 = vst [vmem:[#allocation5 + $0x6b8] sm:$0xff] %v777_v16  ;;  %1290 = vst [vmem:[#allocation5 + $0x6c0] sm:$0xff] %v778_v22  ;;  %v2627_v2 = vld [vmem:[#allocation2 + $0x828] sm:$0xff]  ;;  %v2629_v3 = vld [vmem:[#allocation2 + $0x830] sm:$0xff]  ;;  %v807_v16 = vmul.f32 %v2127_v5, %v2563_v35  ;;  %v817_v35 = vmul.f32 %v2127_v5, %v2599_v52 }
 0x104   :  { %1291 = vst [vmem:[#allocation5 + $0x6c8] sm:$0xff] %v779_v23  ;;  %1292 = vst [vmem:[#allocation5 + $0x6d0] sm:$0xff] %v780_v24  ;;  %v2631_v4 = vld [vmem:[#allocation2 + $0x838] sm:$0xff]  ;;  %v2643_v11 = vld [vmem:[#allocation2 + $0x840] sm:$0xff]  ;;  %v810_v24 = vmul.f32 %v2127_v5, %v2577_v41  ;;  %v821_v41 = vmul.f32 %v2641_v10, %v2615_v60 }
 0x105   :  { %1293 = vst [vmem:[#allocation5 + $0x6d8] sm:$0xff] %v781_v25  ;;  %1294 = vst [vmem:[#allocation5 + $0x6e0] sm:$0xff] %v782_v30  ;;  %v2645_v12 = vld [vmem:[#allocation2 + $0x848] sm:$0xff]  ;;  %v2647_v13 = vld [vmem:[#allocation2 + $0x850] sm:$0xff]  ;;  %v811_v25 = vmul.f32 %v2127_v5, %v2579_v42 }
 0x106   :  { %1295 = vst [vmem:[#allocation5 + $0x6e8] sm:$0xff] %v783_v31  ;;  %1296 = vst [vmem:[#allocation5 + $0x6f0] sm:$0xff] %v784_v32  ;;  %v2649_v14 = vld [vmem:[#allocation2 + $0x858] sm:$0xff]  ;;  %v2659_v19 = vld [vmem:[#allocation2 + $0x860] sm:$0xff]  ;;  %v814_v32 = vmul.f32 %v2127_v5, %v2593_v49  ;;  %v825_v49 = vmul.f32 %v2641_v10, %v2631_v4 }
 0x107   :  { %1297 = vst [vmem:[#allocation5 + $0x6f8] sm:$0xff] %v785_v33  ;;  %1298 = vst [vmem:[#allocation5 + $0x700] sm:$0xff] %v786_v37  ;;  %v2661_v20 = vld [vmem:[#allocation2 + $0x868] sm:$0xff]  ;;  %v2663_v22 = vld [vmem:[#allocation2 + $0x870] sm:$0xff]  ;;  %v815_v33 = vmul.f32 %v2127_v5, %v2595_v50  ;;  %v820_v5 = vmul.f32 %v2641_v10, %v2613_v59 }
 0x108   :  { %1299 = vst [vmem:[#allocation5 + $0x708] sm:$0xff] %v787_v38  ;;  %1300 = vst [vmem:[#allocation5 + $0x710] sm:$0xff] %v788_v39  ;;  %v2665_v23 = vld [vmem:[#allocation2 + $0x878] sm:$0xff]  ;;  %v2675_v28 = vld [vmem:[#allocation2 + $0x880] sm:$0xff]  ;;  %v818_v39 = vmul.f32 %v2641_v10, %v2609_v57  ;;  %v829_v57 = vmul.f32 %v2641_v10, %v2649_v14 }
 0x109   :  { %1301 = vst [vmem:[#allocation5 + $0x718] sm:$0xff] %v789_v40  ;;  %1302 = vst [vmem:[#allocation5 + $0x720] sm:$0xff] %v790_v45  ;;  %v2677_v29 = vld [vmem:[#allocation2 + $0x888] sm:$0xff]  ;;  %v2679_v30 = vld [vmem:[#allocation2 + $0x890] sm:$0xff]  ;;  %v819_v40 = vmul.f32 %v2641_v10, %v2611_v58 }
 0x10a   :  { %1303 = vst [vmem:[#allocation5 + $0x728] sm:$0xff] %v791_v46  ;;  %1304 = vst [vmem:[#allocation5 + $0x730] sm:$0xff] %v792_v47  ;;  %v2681_v31 = vld [vmem:[#allocation2 + $0x898] sm:$0xff]  ;;  %v2691_v36 = vld [vmem:[#allocation2 + $0x8a0] sm:$0xff]  ;;  %v822_v46 = vmul.f32 %v2641_v10, %v2625_v1  ;;  %v823_v47 = vmul.f32 %v2641_v10, %v2627_v2  ;;  %v833_v1 = vmul.f32 %v2641_v10, %v2665_v23 }
 0x10b   :  { %1305 = vst [vmem:[#allocation5 + $0x738] sm:$0xff] %v793_v48  ;;  %1306 = vst [vmem:[#allocation5 + $0x740] sm:$0xff] %v794_v53  ;;  %v2693_v21 = vld [vmem:[#allocation2 + $0x8a8] sm:$0xff]  ;;  %v2695_v37 = vld [vmem:[#allocation2 + $0x8b0] sm:$0xff]  ;;  %v824_v48 = vmul.f32 %v2641_v10, %v2629_v3 }
 0x10c   :  { %1307 = vst [vmem:[#allocation5 + $0x748] sm:$0xff] %v795_v54  ;;  %1308 = vst [vmem:[#allocation5 + $0x750] sm:$0xff] %v796_v55  ;;  %v2697_v38 = vld [vmem:[#allocation2 + $0x8b8] sm:$0xff]  ;;  %v2707_v42 = vld [vmem:[#allocation2 + $0x8c0] sm:$0xff]  ;;  %v826_v54 = vmul.f32 %v2641_v10, %v2643_v11  ;;  %v827_v55 = vmul.f32 %v2641_v10, %v2645_v12  ;;  %v837_v11 = vmul.f32 %v2641_v10, %v2681_v31 }
 0x10d   :  { %1309 = vst [vmem:[#allocation5 + $0x758] sm:$0xff] %v797_v56  ;;  %1310 = vst [vmem:[#allocation5 + $0x760] sm:$0xff] %v798_v61  ;;  %v2709_v43 = vld [vmem:[#allocation2 + $0x8c8] sm:$0xff]  ;;  %v2711_v44 = vld [vmem:[#allocation2 + $0x8d0] sm:$0xff]  ;;  %v828_v56 = vmul.f32 %v2641_v10, %v2647_v13 }
 0x10e   :  { %1311 = vst [vmem:[#allocation5 + $0x768] sm:$0xff] %v799_v62  ;;  %1312 = vst [vmem:[#allocation5 + $0x770] sm:$0xff] %v800_v63  ;;  %v2713_v45 = vld [vmem:[#allocation2 + $0x8d8] sm:$0xff]  ;;  %v2723_v50 = vld [vmem:[#allocation2 + $0x8e0] sm:$0xff]  ;;  %v830_v62 = vmul.f32 %v2641_v10, %v2659_v19  ;;  %v831_v63 = vmul.f32 %v2641_v10, %v2661_v20  ;;  %v841_v19 = vmul.f32 %v2641_v10, %v2697_v38 }
 0x10f   :  { %1313 = vst [vmem:[#allocation5 + $0x778] sm:$0xff] %v801_v0  ;;  %1314 = vst [vmem:[#allocation5 + $0x780] sm:$0xff] %v802_v6  ;;  %v2725_v51 = vld [vmem:[#allocation2 + $0x8e8] sm:$0xff]  ;;  %v2727_v52 = vld [vmem:[#allocation2 + $0x8f0] sm:$0xff]  ;;  %v832_v0 = vmul.f32 %v2641_v10, %v2663_v22 }
 0x110   :  { %1315 = vst [vmem:[#allocation5 + $0x788] sm:$0xff] %v803_v7  ;;  %1316 = vst [vmem:[#allocation5 + $0x790] sm:$0xff] %v804_v8  ;;  %v2729_v53 = vld [vmem:[#allocation2 + $0x8f8] sm:$0xff]  ;;  %v2739_v58 = vld [vmem:[#allocation2 + $0x900] sm:$0xff]  ;;  %v834_v7 = vmul.f32 %v2641_v10, %v2675_v28  ;;  %v835_v8 = vmul.f32 %v2641_v10, %v2677_v29  ;;  %v845_v28 = vmul.f32 %v2641_v10, %v2713_v45 }
 0x111   :  { %1317 = vst [vmem:[#allocation5 + $0x798] sm:$0xff] %v805_v9  ;;  %1318 = vst [vmem:[#allocation5 + $0x7a0] sm:$0xff] %v806_v15  ;;  %v2741_v59 = vld [vmem:[#allocation2 + $0x908] sm:$0xff]  ;;  %v2743_v60 = vld [vmem:[#allocation2 + $0x910] sm:$0xff]  ;;  %v836_v9 = vmul.f32 %v2641_v10, %v2679_v30 }
 0x112   :  { %1319 = vst [vmem:[#allocation5 + $0x7a8] sm:$0xff] %v807_v16  ;;  %1320 = vst [vmem:[#allocation5 + $0x7b0] sm:$0xff] %v808_v17  ;;  %v2745_v61 = vld [vmem:[#allocation2 + $0x918] sm:$0xff]  ;;  %v2755_v2 = vld [vmem:[#allocation2 + $0x920] sm:$0xff]  ;;  %v838_v16 = vmul.f32 %v2641_v10, %v2691_v36  ;;  %v839_v17 = vmul.f32 %v2641_v10, %v2693_v21  ;;  %v849_v36 = vmul.f32 %v2641_v10, %v2729_v53 }
 0x113   :  { %1321 = vst [vmem:[#allocation5 + $0x7b8] sm:$0xff] %v809_v18  ;;  %1322 = vst [vmem:[#allocation5 + $0x7c0] sm:$0xff] %v810_v24  ;;  %v2757_v3 = vld [vmem:[#allocation2 + $0x928] sm:$0xff]  ;;  %v2759_v4 = vld [vmem:[#allocation2 + $0x930] sm:$0xff]  ;;  %v840_v18 = vmul.f32 %v2641_v10, %v2695_v37 }
 0x114   :  { %1323 = vst [vmem:[#allocation5 + $0x7c8] sm:$0xff] %v811_v25  ;;  %1324 = vst [vmem:[#allocation5 + $0x7d0] sm:$0xff] %v812_v26  ;;  %v2761_v6 = vld [vmem:[#allocation2 + $0x938] sm:$0xff]  ;;  %v2771_v12 = vld [vmem:[#allocation2 + $0x940] sm:$0xff]  ;;  %v842_v25 = vmul.f32 %v2641_v10, %v2707_v42  ;;  %v843_v26 = vmul.f32 %v2641_v10, %v2709_v43  ;;  %v853_v42 = vmul.f32 %v2641_v10, %v2745_v61 }
 0x115   :  { %1325 = vst [vmem:[#allocation5 + $0x7d8] sm:$0xff] %v813_v27  ;;  %1326 = vst [vmem:[#allocation5 + $0x7e0] sm:$0xff] %v814_v32  ;;  %v2773_v13 = vld [vmem:[#allocation2 + $0x948] sm:$0xff]  ;;  %v2775_v14 = vld [vmem:[#allocation2 + $0x950] sm:$0xff]  ;;  %v844_v27 = vmul.f32 %v2641_v10, %v2711_v44 }
 0x116   :  { %1327 = vst [vmem:[#allocation5 + $0x7e8] sm:$0xff] %v815_v33  ;;  %1328 = vst [vmem:[#allocation5 + $0x7f0] sm:$0xff] %v816_v34  ;;  %v2777_v15 = vld [vmem:[#allocation2 + $0x958] sm:$0xff]  ;;  %v2787_v20 = vld [vmem:[#allocation2 + $0x960] sm:$0xff]  ;;  %v846_v33 = vmul.f32 %v2641_v10, %v2723_v50  ;;  %v847_v34 = vmul.f32 %v2641_v10, %v2725_v51  ;;  %v857_v50 = vmul.f32 %v2641_v10, %v2761_v6 }
 0x117   :  { %1329 = vst [vmem:[#allocation5 + $0x7f8] sm:$0xff] %v817_v35  ;;  %1330 = vst [vmem:[#allocation5 + $0x800] sm:$0xff] %v818_v39  ;;  %v2789_v22 = vld [vmem:[#allocation2 + $0x968] sm:$0xff]  ;;  %v2791_v23 = vld [vmem:[#allocation2 + $0x970] sm:$0xff]  ;;  %v848_v35 = vmul.f32 %v2641_v10, %v2727_v52 }
 0x118   :  { %1331 = vst [vmem:[#allocation5 + $0x808] sm:$0xff] %v819_v40  ;;  %1332 = vst [vmem:[#allocation5 + $0x810] sm:$0xff] %v820_v5  ;;  %v2793_v24 = vld [vmem:[#allocation2 + $0x978] sm:$0xff]  ;;  %v2803_v29 = vld [vmem:[#allocation2 + $0x980] sm:$0xff]  ;;  %v850_v40 = vmul.f32 %v2641_v10, %v2739_v58  ;;  %v851_v5 = vmul.f32 %v2641_v10, %v2741_v59  ;;  %v861_v58 = vmul.f32 %v2641_v10, %v2777_v15 }
 0x119   :  { %1333 = vst [vmem:[#allocation5 + $0x818] sm:$0xff] %v821_v41  ;;  %1334 = vst [vmem:[#allocation5 + $0x820] sm:$0xff] %v822_v46  ;;  %v2805_v30 = vld [vmem:[#allocation2 + $0x988] sm:$0xff]  ;;  %v2807_v31 = vld [vmem:[#allocation2 + $0x990] sm:$0xff]  ;;  %v852_v41 = vmul.f32 %v2641_v10, %v2743_v60 }
 0x11a   :  { %1335 = vst [vmem:[#allocation5 + $0x828] sm:$0xff] %v823_v47  ;;  %1336 = vst [vmem:[#allocation5 + $0x830] sm:$0xff] %v824_v48  ;;  %v2809_v32 = vld [vmem:[#allocation2 + $0x998] sm:$0xff]  ;;  %v2819_v21 = vld [vmem:[#allocation2 + $0x9a0] sm:$0xff]  ;;  %v854_v47 = vmul.f32 %v2641_v10, %v2755_v2  ;;  %v855_v48 = vmul.f32 %v2641_v10, %v2757_v3  ;;  %v865_v2 = vmul.f32 %v2641_v10, %v2793_v24 }
 0x11b   :  { %1337 = vst [vmem:[#allocation5 + $0x838] sm:$0xff] %v825_v49  ;;  %1338 = vst [vmem:[#allocation5 + $0x840] sm:$0xff] %v826_v54  ;;  %v2821_v37 = vld [vmem:[#allocation2 + $0x9a8] sm:$0xff]  ;;  %v2823_v38 = vld [vmem:[#allocation2 + $0x9b0] sm:$0xff]  ;;  %v856_v49 = vmul.f32 %v2641_v10, %v2759_v4 }
 0x11c   :  { %1339 = vst [vmem:[#allocation5 + $0x848] sm:$0xff] %v827_v55  ;;  %1340 = vst [vmem:[#allocation5 + $0x850] sm:$0xff] %v828_v56  ;;  %v2825_v39 = vld [vmem:[#allocation2 + $0x9b8] sm:$0xff]  ;;  %v2835_v43 = vld [vmem:[#allocation2 + $0x9c0] sm:$0xff]  ;;  %v858_v55 = vmul.f32 %v2641_v10, %v2771_v12  ;;  %v859_v56 = vmul.f32 %v2641_v10, %v2773_v13  ;;  %v869_v12 = vmul.f32 %v2641_v10, %v2809_v32 }
 0x11d   :  { %1341 = vst [vmem:[#allocation5 + $0x858] sm:$0xff] %v829_v57  ;;  %1342 = vst [vmem:[#allocation5 + $0x860] sm:$0xff] %v830_v62  ;;  %v2837_v44 = vld [vmem:[#allocation2 + $0x9c8] sm:$0xff]  ;;  %v2839_v45 = vld [vmem:[#allocation2 + $0x9d0] sm:$0xff]  ;;  %v860_v57 = vmul.f32 %v2641_v10, %v2775_v14 }
 0x11e   :  { %1343 = vst [vmem:[#allocation5 + $0x868] sm:$0xff] %v831_v63  ;;  %1344 = vst [vmem:[#allocation5 + $0x870] sm:$0xff] %v832_v0  ;;  %v2841_v46 = vld [vmem:[#allocation2 + $0x9d8] sm:$0xff]  ;;  %v2851_v51 = vld [vmem:[#allocation2 + $0x9e0] sm:$0xff]  ;;  %v862_v63 = vmul.f32 %v2641_v10, %v2787_v20  ;;  %v863_v0 = vmul.f32 %v2641_v10, %v2789_v22  ;;  %v873_v20 = vmul.f32 %v2641_v10, %v2825_v39 }
 0x11f   :  { %1345 = vst [vmem:[#allocation5 + $0x878] sm:$0xff] %v833_v1  ;;  %1346 = vst [vmem:[#allocation5 + $0x880] sm:$0xff] %v834_v7  ;;  %v2853_v52 = vld [vmem:[#allocation2 + $0x9e8] sm:$0xff]  ;;  %v2855_v53 = vld [vmem:[#allocation2 + $0x9f0] sm:$0xff]  ;;  %v864_v1 = vmul.f32 %v2641_v10, %v2791_v23 }
 0x120   :  { %1347 = vst [vmem:[#allocation5 + $0x888] sm:$0xff] %v835_v8  ;;  %1348 = vst [vmem:[#allocation5 + $0x890] sm:$0xff] %v836_v9  ;;  %v2857_v54 = vld [vmem:[#allocation2 + $0x9f8] sm:$0xff]  ;;  %v2867_v59 = vld [vmem:[#allocation2 + $0xa00] sm:$0xff]  ;;  %v866_v8 = vmul.f32 %v2641_v10, %v2803_v29  ;;  %v867_v9 = vmul.f32 %v2641_v10, %v2805_v30  ;;  %v877_v29 = vmul.f32 %v2641_v10, %v2841_v46 }
 0x121   :  { %1349 = vst [vmem:[#allocation5 + $0x898] sm:$0xff] %v837_v11  ;;  %1350 = vst [vmem:[#allocation5 + $0x8a0] sm:$0xff] %v838_v16  ;;  %v2869_v60 = vld [vmem:[#allocation2 + $0xa08] sm:$0xff]  ;;  %v2871_v61 = vld [vmem:[#allocation2 + $0xa10] sm:$0xff]  ;;  %v868_v11 = vmul.f32 %v2641_v10, %v2807_v31 }
 0x122   :  { %1351 = vst [vmem:[#allocation5 + $0x8a8] sm:$0xff] %v839_v17  ;;  %1352 = vst [vmem:[#allocation5 + $0x8b0] sm:$0xff] %v840_v18  ;;  %v2873_v62 = vld [vmem:[#allocation2 + $0xa18] sm:$0xff]  ;;  %v2883_v3 = vld [vmem:[#allocation2 + $0xa20] sm:$0xff]  ;;  %v870_v17 = vmul.f32 %v2641_v10, %v2819_v21  ;;  %v871_v18 = vmul.f32 %v2641_v10, %v2821_v37  ;;  %v881_v21 = vmul.f32 %v2641_v10, %v2857_v54 }
 0x123   :  { %1353 = vst [vmem:[#allocation5 + $0x8b8] sm:$0xff] %v841_v19  ;;  %1354 = vst [vmem:[#allocation5 + $0x8c0] sm:$0xff] %v842_v25  ;;  %v2885_v4 = vld [vmem:[#allocation2 + $0xa28] sm:$0xff]  ;;  %v2887_v6 = vld [vmem:[#allocation2 + $0xa30] sm:$0xff]  ;;  %v872_v19 = vmul.f32 %v2641_v10, %v2823_v38 }
 0x124   :  { %1355 = vst [vmem:[#allocation5 + $0x8c8] sm:$0xff] %v843_v26  ;;  %1356 = vst [vmem:[#allocation5 + $0x8d0] sm:$0xff] %v844_v27  ;;  %v2889_v7 = vld [vmem:[#allocation2 + $0xa38] sm:$0xff]  ;;  %v2899_v13 = vld [vmem:[#allocation2 + $0xa40] sm:$0xff]  ;;  %v874_v26 = vmul.f32 %v2641_v10, %v2835_v43  ;;  %v875_v27 = vmul.f32 %v2641_v10, %v2837_v44  ;;  %v885_v43 = vmul.f32 %v2641_v10, %v2873_v62 }
 0x125   :  { %1357 = vst [vmem:[#allocation5 + $0x8d8] sm:$0xff] %v845_v28  ;;  %1358 = vst [vmem:[#allocation5 + $0x8e0] sm:$0xff] %v846_v33  ;;  %v2901_v14 = vld [vmem:[#allocation2 + $0xa48] sm:$0xff]  ;;  %v2903_v15 = vld [vmem:[#allocation2 + $0xa50] sm:$0xff]  ;;  %v876_v28 = vmul.f32 %v2641_v10, %v2839_v45 }
 0x126   :  { %1359 = vst [vmem:[#allocation5 + $0x8e8] sm:$0xff] %v847_v34  ;;  %1360 = vst [vmem:[#allocation5 + $0x8f0] sm:$0xff] %v848_v35  ;;  %v2905_v16 = vld [vmem:[#allocation2 + $0xa58] sm:$0xff]  ;;  %v2915_v22 = vld [vmem:[#allocation2 + $0xa60] sm:$0xff]  ;;  %v878_v34 = vmul.f32 %v2641_v10, %v2851_v51  ;;  %v879_v35 = vmul.f32 %v2641_v10, %v2853_v52  ;;  %v889_v51 = vmul.f32 %v2641_v10, %v2889_v7 }
 0x127   :  { %1361 = vst [vmem:[#allocation5 + $0x8f8] sm:$0xff] %v849_v36  ;;  %1362 = vst [vmem:[#allocation5 + $0x900] sm:$0xff] %v850_v40  ;;  %v2917_v23 = vld [vmem:[#allocation2 + $0xa68] sm:$0xff]  ;;  %v2919_v24 = vld [vmem:[#allocation2 + $0xa70] sm:$0xff]  ;;  %v880_v36 = vmul.f32 %v2641_v10, %v2855_v53 }
 0x128   :  { %1363 = vst [vmem:[#allocation5 + $0x908] sm:$0xff] %v851_v5  ;;  %1364 = vst [vmem:[#allocation5 + $0x910] sm:$0xff] %v852_v41  ;;  %v2921_v25 = vld [vmem:[#allocation2 + $0xa78] sm:$0xff]  ;;  %v2931_v30 = vld [vmem:[#allocation2 + $0xa80] sm:$0xff]  ;;  %v882_v5 = vmul.f32 %v2641_v10, %v2867_v59  ;;  %v883_v41 = vmul.f32 %v2641_v10, %v2869_v60  ;;  %v893_v59 = vmul.f32 %v2641_v10, %v2905_v16 }
 0x129   :  { %1365 = vst [vmem:[#allocation5 + $0x918] sm:$0xff] %v853_v42  ;;  %1366 = vst [vmem:[#allocation5 + $0x920] sm:$0xff] %v854_v47  ;;  %v2933_v31 = vld [vmem:[#allocation2 + $0xa88] sm:$0xff]  ;;  %v2935_v32 = vld [vmem:[#allocation2 + $0xa90] sm:$0xff]  ;;  %v884_v42 = vmul.f32 %v2641_v10, %v2871_v61 }
 0x12a   :  { %1367 = vst [vmem:[#allocation5 + $0x928] sm:$0xff] %v855_v48  ;;  %1368 = vst [vmem:[#allocation5 + $0x930] sm:$0xff] %v856_v49  ;;  %v2937_v33 = vld [vmem:[#allocation2 + $0xa98] sm:$0xff]  ;;  %v2947_v37 = vld [vmem:[#allocation2 + $0xaa0] sm:$0xff]  ;;  %v886_v48 = vmul.f32 %v2641_v10, %v2883_v3  ;;  %v887_v49 = vmul.f32 %v2641_v10, %v2885_v4  ;;  %v897_v3 = vmul.f32 %v2641_v10, %v2921_v25 }
 0x12b   :  { %1369 = vst [vmem:[#allocation5 + $0x938] sm:$0xff] %v857_v50  ;;  %1370 = vst [vmem:[#allocation5 + $0x940] sm:$0xff] %v858_v55  ;;  %v2949_v38 = vld [vmem:[#allocation2 + $0xaa8] sm:$0xff]  ;;  %v2951_v39 = vld [vmem:[#allocation2 + $0xab0] sm:$0xff]  ;;  %v888_v50 = vmul.f32 %v2641_v10, %v2887_v6 }
 0x12c   :  { %1371 = vst [vmem:[#allocation5 + $0x948] sm:$0xff] %v859_v56  ;;  %1372 = vst [vmem:[#allocation5 + $0x950] sm:$0xff] %v860_v57  ;;  %v2953_v40 = vld [vmem:[#allocation2 + $0xab8] sm:$0xff]  ;;  %v2963_v44 = vld [vmem:[#allocation2 + $0xac0] sm:$0xff]  ;;  %v890_v56 = vmul.f32 %v2641_v10, %v2899_v13  ;;  %v891_v57 = vmul.f32 %v2641_v10, %v2901_v14  ;;  %v901_v13 = vmul.f32 %v2641_v10, %v2937_v33 }
 0x12d   :  { %1373 = vst [vmem:[#allocation5 + $0x958] sm:$0xff] %v861_v58  ;;  %1374 = vst [vmem:[#allocation5 + $0x960] sm:$0xff] %v862_v63  ;;  %v2965_v45 = vld [vmem:[#allocation2 + $0xac8] sm:$0xff]  ;;  %v2967_v46 = vld [vmem:[#allocation2 + $0xad0] sm:$0xff]  ;;  %v892_v58 = vmul.f32 %v2641_v10, %v2903_v15 }
 0x12e   :  { %1375 = vst [vmem:[#allocation5 + $0x968] sm:$0xff] %v863_v0  ;;  %1376 = vst [vmem:[#allocation5 + $0x970] sm:$0xff] %v864_v1  ;;  %v2969_v47 = vld [vmem:[#allocation2 + $0xad8] sm:$0xff]  ;;  %v2979_v52 = vld [vmem:[#allocation2 + $0xae0] sm:$0xff]  ;;  %v894_v0 = vmul.f32 %v2641_v10, %v2915_v22  ;;  %v895_v1 = vmul.f32 %v2641_v10, %v2917_v23  ;;  %v905_v22 = vmul.f32 %v2641_v10, %v2953_v40 }
 0x12f   :  { %1377 = vst [vmem:[#allocation5 + $0x978] sm:$0xff] %v865_v2  ;;  %1378 = vst [vmem:[#allocation5 + $0x980] sm:$0xff] %v866_v8  ;;  %v2981_v53 = vld [vmem:[#allocation2 + $0xae8] sm:$0xff]  ;;  %v2983_v54 = vld [vmem:[#allocation2 + $0xaf0] sm:$0xff]  ;;  %v896_v2 = vmul.f32 %v2641_v10, %v2919_v24 }
 0x130   :  { %1379 = vst [vmem:[#allocation5 + $0x988] sm:$0xff] %v867_v9  ;;  %1380 = vst [vmem:[#allocation5 + $0x990] sm:$0xff] %v868_v11  ;;  %v2985_v55 = vld [vmem:[#allocation2 + $0xaf8] sm:$0xff]  ;;  %v2995_v60 = vld [vmem:[#allocation2 + $0xb00] sm:$0xff]  ;;  %v898_v9 = vmul.f32 %v2641_v10, %v2931_v30  ;;  %v899_v11 = vmul.f32 %v2641_v10, %v2933_v31  ;;  %v909_v30 = vmul.f32 %v2641_v10, %v2969_v47 }
 0x131   :  { %1381 = vst [vmem:[#allocation5 + $0x998] sm:$0xff] %v869_v12  ;;  %1382 = vst [vmem:[#allocation5 + $0x9a0] sm:$0xff] %v870_v17  ;;  %v2997_v61 = vld [vmem:[#allocation2 + $0xb08] sm:$0xff]  ;;  %v2999_v62 = vld [vmem:[#allocation2 + $0xb10] sm:$0xff]  ;;  %v900_v12 = vmul.f32 %v2641_v10, %v2935_v32 }
 0x132   :  { %1383 = vst [vmem:[#allocation5 + $0x9a8] sm:$0xff] %v871_v18  ;;  %1384 = vst [vmem:[#allocation5 + $0x9b0] sm:$0xff] %v872_v19  ;;  %v3001_v63 = vld [vmem:[#allocation2 + $0xb18] sm:$0xff]  ;;  %v3011_v4 = vld [vmem:[#allocation2 + $0xb20] sm:$0xff]  ;;  %v902_v18 = vmul.f32 %v2641_v10, %v2947_v37  ;;  %v903_v19 = vmul.f32 %v2641_v10, %v2949_v38  ;;  %v913_v37 = vmul.f32 %v2641_v10, %v2985_v55 }
 0x133   :  { %1385 = vst [vmem:[#allocation5 + $0x9b8] sm:$0xff] %v873_v20  ;;  %1386 = vst [vmem:[#allocation5 + $0x9c0] sm:$0xff] %v874_v26  ;;  %v3013_v6 = vld [vmem:[#allocation2 + $0xb28] sm:$0xff]  ;;  %v3015_v7 = vld [vmem:[#allocation2 + $0xb30] sm:$0xff]  ;;  %v904_v20 = vmul.f32 %v2641_v10, %v2951_v39 }
 0x134   :  { %1387 = vst [vmem:[#allocation5 + $0x9c8] sm:$0xff] %v875_v27  ;;  %1388 = vst [vmem:[#allocation5 + $0x9d0] sm:$0xff] %v876_v28  ;;  %v3017_v8 = vld [vmem:[#allocation2 + $0xb38] sm:$0xff]  ;;  %v3027_v14 = vld [vmem:[#allocation2 + $0xb40] sm:$0xff]  ;;  %v906_v27 = vmul.f32 %v2641_v10, %v2963_v44  ;;  %v907_v28 = vmul.f32 %v2641_v10, %v2965_v45  ;;  %v917_v44 = vmul.f32 %v2641_v10, %v3001_v63 }
 0x135   :  { %1389 = vst [vmem:[#allocation5 + $0x9d8] sm:$0xff] %v877_v29  ;;  %1390 = vst [vmem:[#allocation5 + $0x9e0] sm:$0xff] %v878_v34  ;;  %v3029_v15 = vld [vmem:[#allocation2 + $0xb48] sm:$0xff]  ;;  %v3031_v16 = vld [vmem:[#allocation2 + $0xb50] sm:$0xff]  ;;  %v908_v29 = vmul.f32 %v2641_v10, %v2967_v46 }
 0x136   :  { %1391 = vst [vmem:[#allocation5 + $0x9e8] sm:$0xff] %v879_v35  ;;  %1392 = vst [vmem:[#allocation5 + $0x9f0] sm:$0xff] %v880_v36  ;;  %v3033_v17 = vld [vmem:[#allocation2 + $0xb58] sm:$0xff]  ;;  %v3043_v23 = vld [vmem:[#allocation2 + $0xb60] sm:$0xff]  ;;  %v910_v35 = vmul.f32 %v2641_v10, %v2979_v52  ;;  %v911_v36 = vmul.f32 %v2641_v10, %v2981_v53  ;;  %v921_v52 = vmul.f32 %v2641_v10, %v3017_v8 }
 0x137   :  { %1393 = vst [vmem:[#allocation5 + $0x9f8] sm:$0xff] %v881_v21  ;;  %1394 = vst [vmem:[#allocation5 + $0xa00] sm:$0xff] %v882_v5  ;;  %v3045_v24 = vld [vmem:[#allocation2 + $0xb68] sm:$0xff]  ;;  %v3047_v25 = vld [vmem:[#allocation2 + $0xb70] sm:$0xff]  ;;  %v912_v21 = vmul.f32 %v2641_v10, %v2983_v54 }
 0x138   :  { %1395 = vst [vmem:[#allocation5 + $0xa08] sm:$0xff] %v883_v41  ;;  %1396 = vst [vmem:[#allocation5 + $0xa10] sm:$0xff] %v884_v42  ;;  %v3049_v26 = vld [vmem:[#allocation2 + $0xb78] sm:$0xff]  ;;  %v3059_v31 = vld [vmem:[#allocation2 + $0xb80] sm:$0xff]  ;;  %v914_v41 = vmul.f32 %v2641_v10, %v2995_v60  ;;  %v915_v42 = vmul.f32 %v2641_v10, %v2997_v61  ;;  %v925_v60 = vmul.f32 %v2641_v10, %v3033_v17 }
 0x139   :  { %1397 = vst [vmem:[#allocation5 + $0xa18] sm:$0xff] %v885_v43  ;;  %1398 = vst [vmem:[#allocation5 + $0xa20] sm:$0xff] %v886_v48  ;;  %v3061_v32 = vld [vmem:[#allocation2 + $0xb88] sm:$0xff]  ;;  %v3063_v33 = vld [vmem:[#allocation2 + $0xb90] sm:$0xff]  ;;  %v916_v43 = vmul.f32 %v2641_v10, %v2999_v62 }
 0x13a   :  { %1399 = vst [vmem:[#allocation5 + $0xa28] sm:$0xff] %v887_v49  ;;  %1400 = vst [vmem:[#allocation5 + $0xa30] sm:$0xff] %v888_v50  ;;  %v3065_v34 = vld [vmem:[#allocation2 + $0xb98] sm:$0xff]  ;;  %v3075_v38 = vld [vmem:[#allocation2 + $0xba0] sm:$0xff]  ;;  %v918_v49 = vmul.f32 %v2641_v10, %v3011_v4  ;;  %v919_v50 = vmul.f32 %v2641_v10, %v3013_v6  ;;  %v929_v4 = vmul.f32 %v2641_v10, %v3049_v26 }
 0x13b   :  { %1401 = vst [vmem:[#allocation5 + $0xa38] sm:$0xff] %v889_v51  ;;  %1402 = vst [vmem:[#allocation5 + $0xa40] sm:$0xff] %v890_v56  ;;  %v3077_v39 = vld [vmem:[#allocation2 + $0xba8] sm:$0xff]  ;;  %v3079_v40 = vld [vmem:[#allocation2 + $0xbb0] sm:$0xff]  ;;  %v920_v51 = vmul.f32 %v2641_v10, %v3015_v7 }
 0x13c   :  { %1403 = vst [vmem:[#allocation5 + $0xa48] sm:$0xff] %v891_v57  ;;  %1404 = vst [vmem:[#allocation5 + $0xa50] sm:$0xff] %v892_v58  ;;  %v3081_v5 = vld [vmem:[#allocation2 + $0xbb8] sm:$0xff]  ;;  %v3091_v45 = vld [vmem:[#allocation2 + $0xbc0] sm:$0xff]  ;;  %v922_v57 = vmul.f32 %v2641_v10, %v3027_v14  ;;  %v923_v58 = vmul.f32 %v2641_v10, %v3029_v15  ;;  %v933_v14 = vmul.f32 %v2641_v10, %v3065_v34  ;;  %v3155_v15 = vpop.permute.xlu1 %559 }
 0x13d   :  { %1405 = vst [vmem:[#allocation5 + $0xa58] sm:$0xff] %v893_v59  ;;  %1406 = vst [vmem:[#allocation5 + $0xa60] sm:$0xff] %v894_v0  ;;  %v3093_v46 = vld [vmem:[#allocation2 + $0xbc8] sm:$0xff]  ;;  %v3095_v47 = vld [vmem:[#allocation2 + $0xbd0] sm:$0xff]  ;;  %v924_v59 = vmul.f32 %v2641_v10, %v3031_v16 }
 0x13e   :  { %1407 = vst [vmem:[#allocation5 + $0xa68] sm:$0xff] %v895_v1  ;;  %1408 = vst [vmem:[#allocation5 + $0xa70] sm:$0xff] %v896_v2  ;;  %v3097_v48 = vld [vmem:[#allocation2 + $0xbd8] sm:$0xff]  ;;  %v3107_v53 = vld [vmem:[#allocation2 + $0xbe0] sm:$0xff]  ;;  %v926_v1 = vmul.f32 %v2641_v10, %v3043_v23  ;;  %v927_v2 = vmul.f32 %v2641_v10, %v3045_v24  ;;  %v936_v23 = vmul.f32 %v2641_v10, %v3079_v40 }
 0x13f   :  { %1409 = vst [vmem:[#allocation5 + $0xa78] sm:$0xff] %v897_v3  ;;  %1410 = vst [vmem:[#allocation5 + $0xa80] sm:$0xff] %v898_v9  ;;  %v3109_v54 = vld [vmem:[#allocation2 + $0xbe8] sm:$0xff]  ;;  %v3111_v55 = vld [vmem:[#allocation2 + $0xbf0] sm:$0xff]  ;;  %v928_v3 = vmul.f32 %v2641_v10, %v3047_v25  ;;  %v937_v24 = vmul.f32 %v2641_v10, %v3081_v5 }
 0x140   :  { %1411 = vst [vmem:[#allocation5 + $0xa88] sm:$0xff] %v899_v11  ;;  %1412 = vst [vmem:[#allocation5 + $0xa90] sm:$0xff] %v900_v12  ;;  %v3113_v56 = vld [vmem:[#allocation2 + $0xbf8] sm:$0xff]  ;;  %v3123_v61 = vld [vmem:[#allocation2 + $0xc00] sm:$0xff]  ;;  %v930_v11 = vmul.f32 %v2641_v10, %v3059_v31  ;;  %v931_v12 = vmul.f32 %v2641_v10, %v3061_v32  ;;  %v940_v31 = vmul.f32 %v2641_v10, %v3095_v47 }
 0x141   :  { %1413 = vst [vmem:[#allocation5 + $0xa98] sm:$0xff] %v901_v13  ;;  %1414 = vst [vmem:[#allocation5 + $0xaa0] sm:$0xff] %v902_v18  ;;  %v3125_v62 = vld [vmem:[#allocation2 + $0xc08] sm:$0xff]  ;;  %v3127_v63 = vld [vmem:[#allocation2 + $0xc10] sm:$0xff]  ;;  %v932_v13 = vmul.f32 %v2641_v10, %v3063_v33  ;;  %v941_v32 = vmul.f32 %v2641_v10, %v3097_v48 }
 0x142   :  { %1415 = vst [vmem:[#allocation5 + $0xaa8] sm:$0xff] %v903_v19  ;;  %1416 = vst [vmem:[#allocation5 + $0xab0] sm:$0xff] %v904_v20  ;;  %v3129_v0 = vld [vmem:[#allocation2 + $0xc18] sm:$0xff]  ;;  %v3139_v6 = vld [vmem:[#allocation2 + $0xc20] sm:$0xff]  ;;  %v934_v20 = vmul.f32 %v2641_v10, %v3075_v38  ;;  %v944_v38 = vmul.f32 %v2641_v10, %v3111_v55 }
 0x143   :  { %1417 = vst [vmem:[#allocation5 + $0xab8] sm:$0xff] %v905_v22  ;;  %1418 = vst [vmem:[#allocation5 + $0xac0] sm:$0xff] %v906_v27  ;;  %v3141_v7 = vld [vmem:[#allocation2 + $0xc28] sm:$0xff]  ;;  %v3143_v8 = vld [vmem:[#allocation2 + $0xc30] sm:$0xff]  ;;  %v935_v22 = vmul.f32 %v2641_v10, %v3077_v39  ;;  %v945_v39 = vmul.f32 %v2641_v10, %v3113_v56 }
 0x144   :  { %1419 = vst [vmem:[#allocation5 + $0xac8] sm:$0xff] %v907_v28  ;;  %1420 = vst [vmem:[#allocation5 + $0xad0] sm:$0xff] %v908_v29  ;;  %v3145_v9 = vld [vmem:[#allocation2 + $0xc38] sm:$0xff]  ;;  %v3157_v16 = vld [vmem:[#allocation2 + $0xc40] sm:$0xff]  ;;  %v938_v29 = vmul.f32 %v2641_v10, %v3091_v45  ;;  %v949_v45 = vmul.f32 %v3155_v15, %v3129_v0 }
 0x145   :  { %1421 = vst [vmem:[#allocation5 + $0xad8] sm:$0xff] %v909_v30  ;;  %1422 = vst [vmem:[#allocation5 + $0xae0] sm:$0xff] %v910_v35  ;;  %v3159_v17 = vld [vmem:[#allocation2 + $0xc48] sm:$0xff]  ;;  %v3161_v18 = vld [vmem:[#allocation2 + $0xc50] sm:$0xff]  ;;  %v939_v30 = vmul.f32 %v2641_v10, %v3093_v46 }
 0x146   :  { %1423 = vst [vmem:[#allocation5 + $0xae8] sm:$0xff] %v911_v36  ;;  %1424 = vst [vmem:[#allocation5 + $0xaf0] sm:$0xff] %v912_v21  ;;  %v3163_v19 = vld [vmem:[#allocation2 + $0xc58] sm:$0xff]  ;;  %v3173_v25 = vld [vmem:[#allocation2 + $0xc60] sm:$0xff]  ;;  %v942_v21 = vmul.f32 %v2641_v10, %v3107_v53  ;;  %v953_v53 = vmul.f32 %v3155_v15, %v3145_v9 }
 0x147   :  { %1425 = vst [vmem:[#allocation5 + $0xaf8] sm:$0xff] %v913_v37  ;;  %1426 = vst [vmem:[#allocation5 + $0xb00] sm:$0xff] %v914_v41  ;;  %v3175_v26 = vld [vmem:[#allocation2 + $0xc68] sm:$0xff]  ;;  %v3177_v27 = vld [vmem:[#allocation2 + $0xc70] sm:$0xff]  ;;  %v943_v37 = vmul.f32 %v2641_v10, %v3109_v54  ;;  %v948_v10 = vmul.f32 %v3155_v15, %v3127_v63 }
 0x148   :  { %1427 = vst [vmem:[#allocation5 + $0xb08] sm:$0xff] %v915_v42  ;;  %1428 = vst [vmem:[#allocation5 + $0xb10] sm:$0xff] %v916_v43  ;;  %v3179_v28 = vld [vmem:[#allocation2 + $0xc78] sm:$0xff]  ;;  %v3189_v33 = vld [vmem:[#allocation2 + $0xc80] sm:$0xff]  ;;  %v946_v43 = vmul.f32 %v3155_v15, %v3123_v61  ;;  %v957_v61 = vmul.f32 %v3155_v15, %v3163_v19 }
 0x149   :  { %1429 = vst [vmem:[#allocation5 + $0xb18] sm:$0xff] %v917_v44  ;;  %1430 = vst [vmem:[#allocation5 + $0xb20] sm:$0xff] %v918_v49  ;;  %v3191_v34 = vld [vmem:[#allocation2 + $0xc88] sm:$0xff]  ;;  %v3193_v35 = vld [vmem:[#allocation2 + $0xc90] sm:$0xff]  ;;  %v947_v44 = vmul.f32 %v3155_v15, %v3125_v62 }
 0x14a   :  { %1431 = vst [vmem:[#allocation5 + $0xb28] sm:$0xff] %v919_v50  ;;  %1432 = vst [vmem:[#allocation5 + $0xb30] sm:$0xff] %v920_v51  ;;  %v3195_v36 = vld [vmem:[#allocation2 + $0xc98] sm:$0xff]  ;;  %v3205_v40 = vld [vmem:[#allocation2 + $0xca0] sm:$0xff]  ;;  %v950_v50 = vmul.f32 %v3155_v15, %v3139_v6  ;;  %v951_v51 = vmul.f32 %v3155_v15, %v3141_v7  ;;  %v961_v6 = vmul.f32 %v3155_v15, %v3179_v28 }
 0x14b   :  { %1433 = vst [vmem:[#allocation5 + $0xb38] sm:$0xff] %v921_v52  ;;  %1434 = vst [vmem:[#allocation5 + $0xb40] sm:$0xff] %v922_v57  ;;  %v3207_v5 = vld [vmem:[#allocation2 + $0xca8] sm:$0xff]  ;;  %v3209_v41 = vld [vmem:[#allocation2 + $0xcb0] sm:$0xff]  ;;  %v952_v52 = vmul.f32 %v3155_v15, %v3143_v8 }
 0x14c   :  { %1435 = vst [vmem:[#allocation5 + $0xb48] sm:$0xff] %v923_v58  ;;  %1436 = vst [vmem:[#allocation5 + $0xb50] sm:$0xff] %v924_v59  ;;  %v3211_v42 = vld [vmem:[#allocation2 + $0xcb8] sm:$0xff]  ;;  %v3221_v46 = vld [vmem:[#allocation2 + $0xcc0] sm:$0xff]  ;;  %v954_v58 = vmul.f32 %v3155_v15, %v3157_v16  ;;  %v955_v59 = vmul.f32 %v3155_v15, %v3159_v17  ;;  %v965_v16 = vmul.f32 %v3155_v15, %v3195_v36 }
 0x14d   :  { %1437 = vst [vmem:[#allocation5 + $0xb58] sm:$0xff] %v925_v60  ;;  %1438 = vst [vmem:[#allocation5 + $0xb60] sm:$0xff] %v926_v1  ;;  %v3223_v47 = vld [vmem:[#allocation2 + $0xcc8] sm:$0xff]  ;;  %v3225_v48 = vld [vmem:[#allocation2 + $0xcd0] sm:$0xff]  ;;  %v956_v60 = vmul.f32 %v3155_v15, %v3161_v18 }
 0x14e   :  { %1439 = vst [vmem:[#allocation5 + $0xb68] sm:$0xff] %v927_v2  ;;  %1440 = vst [vmem:[#allocation5 + $0xb70] sm:$0xff] %v928_v3  ;;  %v3227_v49 = vld [vmem:[#allocation2 + $0xcd8] sm:$0xff]  ;;  %v3237_v54 = vld [vmem:[#allocation2 + $0xce0] sm:$0xff]  ;;  %v958_v2 = vmul.f32 %v3155_v15, %v3173_v25  ;;  %v959_v3 = vmul.f32 %v3155_v15, %v3175_v26  ;;  %v969_v25 = vmul.f32 %v3155_v15, %v3211_v42 }
 0x14f   :  { %1441 = vst [vmem:[#allocation5 + $0xb78] sm:$0xff] %v929_v4  ;;  %1442 = vst [vmem:[#allocation5 + $0xb80] sm:$0xff] %v930_v11  ;;  %v3239_v55 = vld [vmem:[#allocation2 + $0xce8] sm:$0xff]  ;;  %v3241_v56 = vld [vmem:[#allocation2 + $0xcf0] sm:$0xff]  ;;  %v960_v4 = vmul.f32 %v3155_v15, %v3177_v27 }
 0x150   :  { %1443 = vst [vmem:[#allocation5 + $0xb88] sm:$0xff] %v931_v12  ;;  %1444 = vst [vmem:[#allocation5 + $0xb90] sm:$0xff] %v932_v13  ;;  %v3243_v57 = vld [vmem:[#allocation2 + $0xcf8] sm:$0xff]  ;;  %v3253_v62 = vld [vmem:[#allocation2 + $0xd00] sm:$0xff]  ;;  %v962_v12 = vmul.f32 %v3155_v15, %v3189_v33  ;;  %v963_v13 = vmul.f32 %v3155_v15, %v3191_v34  ;;  %v973_v33 = vmul.f32 %v3155_v15, %v3227_v49 }
 0x151   :  { %1445 = vst [vmem:[#allocation5 + $0xb98] sm:$0xff] %v933_v14  ;;  %1446 = vst [vmem:[#allocation5 + $0xba0] sm:$0xff] %v934_v20  ;;  %v3255_v63 = vld [vmem:[#allocation2 + $0xd08] sm:$0xff]  ;;  %v3257_v0 = vld [vmem:[#allocation2 + $0xd10] sm:$0xff]  ;;  %v964_v14 = vmul.f32 %v3155_v15, %v3193_v35 }
 0x152   :  { %1447 = vst [vmem:[#allocation5 + $0xba8] sm:$0xff] %v935_v22  ;;  %1448 = vst [vmem:[#allocation5 + $0xbb0] sm:$0xff] %v936_v23  ;;  %v3259_v1 = vld [vmem:[#allocation2 + $0xd18] sm:$0xff]  ;;  %v3269_v7 = vld [vmem:[#allocation2 + $0xd20] sm:$0xff]  ;;  %v966_v22 = vmul.f32 %v3155_v15, %v3205_v40  ;;  %v967_v23 = vmul.f32 %v3155_v15, %v3207_v5  ;;  %v977_v40 = vmul.f32 %v3155_v15, %v3243_v57 }
 0x153   :  { %1449 = vst [vmem:[#allocation5 + $0xbb8] sm:$0xff] %v937_v24  ;;  %1450 = vst [vmem:[#allocation5 + $0xbc0] sm:$0xff] %v938_v29  ;;  %v3271_v8 = vld [vmem:[#allocation2 + $0xd28] sm:$0xff]  ;;  %v3273_v9 = vld [vmem:[#allocation2 + $0xd30] sm:$0xff]  ;;  %v968_v24 = vmul.f32 %v3155_v15, %v3209_v41 }
 0x154   :  { %1451 = vst [vmem:[#allocation5 + $0xbc8] sm:$0xff] %v939_v30  ;;  %1452 = vst [vmem:[#allocation5 + $0xbd0] sm:$0xff] %v940_v31  ;;  %v3275_v11 = vld [vmem:[#allocation2 + $0xd38] sm:$0xff]  ;;  %v3285_v17 = vld [vmem:[#allocation2 + $0xd40] sm:$0xff]  ;;  %v970_v30 = vmul.f32 %v3155_v15, %v3221_v46  ;;  %v971_v31 = vmul.f32 %v3155_v15, %v3223_v47  ;;  %v981_v46 = vmul.f32 %v3155_v15, %v3259_v1 }
 0x155   :  { %1453 = vst [vmem:[#allocation5 + $0xbd8] sm:$0xff] %v941_v32  ;;  %1454 = vst [vmem:[#allocation5 + $0xbe0] sm:$0xff] %v942_v21  ;;  %v3287_v18 = vld [vmem:[#allocation2 + $0xd48] sm:$0xff]  ;;  %v3289_v19 = vld [vmem:[#allocation2 + $0xd50] sm:$0xff]  ;;  %v972_v32 = vmul.f32 %v3155_v15, %v3225_v48 }
 0x156   :  { %1455 = vst [vmem:[#allocation5 + $0xbe8] sm:$0xff] %v943_v37  ;;  %1456 = vst [vmem:[#allocation5 + $0xbf0] sm:$0xff] %v944_v38  ;;  %v3291_v20 = vld [vmem:[#allocation2 + $0xd58] sm:$0xff]  ;;  %v3301_v26 = vld [vmem:[#allocation2 + $0xd60] sm:$0xff]  ;;  %v974_v37 = vmul.f32 %v3155_v15, %v3237_v54  ;;  %v975_v38 = vmul.f32 %v3155_v15, %v3239_v55  ;;  %v985_v54 = vmul.f32 %v3155_v15, %v3275_v11 }
 0x157   :  { %1457 = vst [vmem:[#allocation5 + $0xbf8] sm:$0xff] %v945_v39  ;;  %1458 = vst [vmem:[#allocation5 + $0xc00] sm:$0xff] %v946_v43  ;;  %v3303_v27 = vld [vmem:[#allocation2 + $0xd68] sm:$0xff]  ;;  %v3305_v28 = vld [vmem:[#allocation2 + $0xd70] sm:$0xff]  ;;  %v976_v39 = vmul.f32 %v3155_v15, %v3241_v56 }
 0x158   :  { %1459 = vst [vmem:[#allocation5 + $0xc08] sm:$0xff] %v947_v44  ;;  %1460 = vst [vmem:[#allocation5 + $0xc10] sm:$0xff] %v948_v10  ;;  %v3307_v29 = vld [vmem:[#allocation2 + $0xd78] sm:$0xff]  ;;  %v3317_v34 = vld [vmem:[#allocation2 + $0xd80] sm:$0xff]  ;;  %v978_v44 = vmul.f32 %v3155_v15, %v3253_v62  ;;  %v979_v10 = vmul.f32 %v3155_v15, %v3255_v63  ;;  %v989_v62 = vmul.f32 %v3155_v15, %v3291_v20 }
 0x159   :  { %1461 = vst [vmem:[#allocation5 + $0xc18] sm:$0xff] %v949_v45  ;;  %1462 = vst [vmem:[#allocation5 + $0xc20] sm:$0xff] %v950_v50  ;;  %v3319_v35 = vld [vmem:[#allocation2 + $0xd88] sm:$0xff]  ;;  %v3321_v36 = vld [vmem:[#allocation2 + $0xd90] sm:$0xff]  ;;  %v980_v45 = vmul.f32 %v3155_v15, %v3257_v0 }
 0x15a   :  { %1463 = vst [vmem:[#allocation5 + $0xc28] sm:$0xff] %v951_v51  ;;  %1464 = vst [vmem:[#allocation5 + $0xc30] sm:$0xff] %v952_v52  ;;  %v3323_v21 = vld [vmem:[#allocation2 + $0xd98] sm:$0xff]  ;;  %v3333_v5 = vld [vmem:[#allocation2 + $0xda0] sm:$0xff]  ;;  %v982_v51 = vmul.f32 %v3155_v15, %v3269_v7  ;;  %v983_v52 = vmul.f32 %v3155_v15, %v3271_v8  ;;  %v993_v7 = vmul.f32 %v3155_v15, %v3307_v29 }
 0x15b   :  { %1465 = vst [vmem:[#allocation5 + $0xc38] sm:$0xff] %v953_v53  ;;  %1466 = vst [vmem:[#allocation5 + $0xc40] sm:$0xff] %v954_v58  ;;  %v3335_v41 = vld [vmem:[#allocation2 + $0xda8] sm:$0xff]  ;;  %v3337_v42 = vld [vmem:[#allocation2 + $0xdb0] sm:$0xff]  ;;  %v984_v53 = vmul.f32 %v3155_v15, %v3273_v9 }
 0x15c   :  { %1467 = vst [vmem:[#allocation5 + $0xc48] sm:$0xff] %v955_v59  ;;  %1468 = vst [vmem:[#allocation5 + $0xc50] sm:$0xff] %v956_v60  ;;  %v3339_v43 = vld [vmem:[#allocation2 + $0xdb8] sm:$0xff]  ;;  %v3349_v47 = vld [vmem:[#allocation2 + $0xdc0] sm:$0xff]  ;;  %v986_v59 = vmul.f32 %v3155_v15, %v3285_v17  ;;  %v987_v60 = vmul.f32 %v3155_v15, %v3287_v18  ;;  %v997_v17 = vmul.f32 %v3155_v15, %v3323_v21 }
 0x15d   :  { %1469 = vst [vmem:[#allocation5 + $0xc58] sm:$0xff] %v957_v61  ;;  %1470 = vst [vmem:[#allocation5 + $0xc60] sm:$0xff] %v958_v2  ;;  %v3351_v48 = vld [vmem:[#allocation2 + $0xdc8] sm:$0xff]  ;;  %v3353_v49 = vld [vmem:[#allocation2 + $0xdd0] sm:$0xff]  ;;  %v988_v61 = vmul.f32 %v3155_v15, %v3289_v19 }
 0x15e   :  { %1471 = vst [vmem:[#allocation5 + $0xc68] sm:$0xff] %v959_v3  ;;  %1472 = vst [vmem:[#allocation5 + $0xc70] sm:$0xff] %v960_v4  ;;  %v3355_v50 = vld [vmem:[#allocation2 + $0xdd8] sm:$0xff]  ;;  %v3365_v55 = vld [vmem:[#allocation2 + $0xde0] sm:$0xff]  ;;  %v990_v3 = vmul.f32 %v3155_v15, %v3301_v26  ;;  %v991_v4 = vmul.f32 %v3155_v15, %v3303_v27  ;;  %v1001_v26 = vmul.f32 %v3155_v15, %v3339_v43 }
 0x15f   :  { %1473 = vst [vmem:[#allocation5 + $0xc78] sm:$0xff] %v961_v6  ;;  %1474 = vst [vmem:[#allocation5 + $0xc80] sm:$0xff] %v962_v12  ;;  %v3367_v56 = vld [vmem:[#allocation2 + $0xde8] sm:$0xff]  ;;  %v3369_v57 = vld [vmem:[#allocation2 + $0xdf0] sm:$0xff]  ;;  %v992_v6 = vmul.f32 %v3155_v15, %v3305_v28 }
 0x160   :  { %1475 = vst [vmem:[#allocation5 + $0xc88] sm:$0xff] %v963_v13  ;;  %1476 = vst [vmem:[#allocation5 + $0xc90] sm:$0xff] %v964_v14  ;;  %v3371_v58 = vld [vmem:[#allocation2 + $0xdf8] sm:$0xff]  ;;  %v3381_v63 = vld [vmem:[#allocation2 + $0xe00] sm:$0xff]  ;;  %v994_v13 = vmul.f32 %v3155_v15, %v3317_v34  ;;  %v995_v14 = vmul.f32 %v3155_v15, %v3319_v35  ;;  %v1005_v34 = vmul.f32 %v3155_v15, %v3355_v50 }
 0x161   :  { %1477 = vst [vmem:[#allocation5 + $0xc98] sm:$0xff] %v965_v16  ;;  %1478 = vst [vmem:[#allocation5 + $0xca0] sm:$0xff] %v966_v22  ;;  %v3383_v0 = vld [vmem:[#allocation2 + $0xe08] sm:$0xff]  ;;  %v3385_v1 = vld [vmem:[#allocation2 + $0xe10] sm:$0xff]  ;;  %v996_v16 = vmul.f32 %v3155_v15, %v3321_v36 }
 0x162   :  { %1479 = vst [vmem:[#allocation5 + $0xca8] sm:$0xff] %v967_v23  ;;  %1480 = vst [vmem:[#allocation5 + $0xcb0] sm:$0xff] %v968_v24  ;;  %v3387_v2 = vld [vmem:[#allocation2 + $0xe18] sm:$0xff]  ;;  %v3397_v8 = vld [vmem:[#allocation2 + $0xe20] sm:$0xff]  ;;  %v998_v23 = vmul.f32 %v3155_v15, %v3333_v5  ;;  %v999_v24 = vmul.f32 %v3155_v15, %v3335_v41  ;;  %v1009_v5 = vmul.f32 %v3155_v15, %v3371_v58 }
 0x163   :  { %1481 = vst [vmem:[#allocation5 + $0xcb8] sm:$0xff] %v969_v25  ;;  %1482 = vst [vmem:[#allocation5 + $0xcc0] sm:$0xff] %v970_v30  ;;  %v3399_v9 = vld [vmem:[#allocation2 + $0xe28] sm:$0xff]  ;;  %v3401_v11 = vld [vmem:[#allocation2 + $0xe30] sm:$0xff]  ;;  %v1000_v25 = vmul.f32 %v3155_v15, %v3337_v42 }
 0x164   :  { %1483 = vst [vmem:[#allocation5 + $0xcc8] sm:$0xff] %v971_v31  ;;  %1484 = vst [vmem:[#allocation5 + $0xcd0] sm:$0xff] %v972_v32  ;;  %v3403_v12 = vld [vmem:[#allocation2 + $0xe38] sm:$0xff]  ;;  %v3413_v18 = vld [vmem:[#allocation2 + $0xe40] sm:$0xff]  ;;  %v1002_v31 = vmul.f32 %v3155_v15, %v3349_v47  ;;  %v1003_v32 = vmul.f32 %v3155_v15, %v3351_v48  ;;  %v1013_v47 = vmul.f32 %v3155_v15, %v3387_v2 }
 0x165   :  { %1485 = vst [vmem:[#allocation5 + $0xcd8] sm:$0xff] %v973_v33  ;;  %1486 = vst [vmem:[#allocation5 + $0xce0] sm:$0xff] %v974_v37  ;;  %v3415_v19 = vld [vmem:[#allocation2 + $0xe48] sm:$0xff]  ;;  %v3417_v20 = vld [vmem:[#allocation2 + $0xe50] sm:$0xff]  ;;  %v1004_v33 = vmul.f32 %v3155_v15, %v3353_v49 }
 0x166   :  { %1487 = vst [vmem:[#allocation5 + $0xce8] sm:$0xff] %v975_v38  ;;  %1488 = vst [vmem:[#allocation5 + $0xcf0] sm:$0xff] %v976_v39  ;;  %v3419_v22 = vld [vmem:[#allocation2 + $0xe58] sm:$0xff]  ;;  %v3429_v27 = vld [vmem:[#allocation2 + $0xe60] sm:$0xff]  ;;  %v1006_v38 = vmul.f32 %v3155_v15, %v3365_v55  ;;  %v1007_v39 = vmul.f32 %v3155_v15, %v3367_v56  ;;  %v1017_v55 = vmul.f32 %v3155_v15, %v3403_v12 }
 0x167   :  { %1489 = vst [vmem:[#allocation5 + $0xcf8] sm:$0xff] %v977_v40  ;;  %1490 = vst [vmem:[#allocation5 + $0xd00] sm:$0xff] %v978_v44  ;;  %v3431_v28 = vld [vmem:[#allocation2 + $0xe68] sm:$0xff]  ;;  %v3433_v29 = vld [vmem:[#allocation2 + $0xe70] sm:$0xff]  ;;  %v1008_v40 = vmul.f32 %v3155_v15, %v3369_v57 }
 0x168   :  { %1491 = vst [vmem:[#allocation5 + $0xd08] sm:$0xff] %v979_v10  ;;  %1492 = vst [vmem:[#allocation5 + $0xd10] sm:$0xff] %v980_v45  ;;  %v3435_v30 = vld [vmem:[#allocation2 + $0xe78] sm:$0xff]  ;;  %v3445_v35 = vld [vmem:[#allocation2 + $0xe80] sm:$0xff]  ;;  %v1010_v10 = vmul.f32 %v3155_v15, %v3381_v63  ;;  %v1011_v45 = vmul.f32 %v3155_v15, %v3383_v0  ;;  %v1021_v63 = vmul.f32 %v3155_v15, %v3419_v22 }
 0x169   :  { %1493 = vst [vmem:[#allocation5 + $0xd18] sm:$0xff] %v981_v46  ;;  %1494 = vst [vmem:[#allocation5 + $0xd20] sm:$0xff] %v982_v51  ;;  %v3447_v36 = vld [vmem:[#allocation2 + $0xe88] sm:$0xff]  ;;  %v3449_v21 = vld [vmem:[#allocation2 + $0xe90] sm:$0xff]  ;;  %v1012_v46 = vmul.f32 %v3155_v15, %v3385_v1 }
 0x16a   :  { %1495 = vst [vmem:[#allocation5 + $0xd28] sm:$0xff] %v983_v52  ;;  %1496 = vst [vmem:[#allocation5 + $0xd30] sm:$0xff] %v984_v53  ;;  %v3451_v37 = vld [vmem:[#allocation2 + $0xe98] sm:$0xff]  ;;  %v3461_v41 = vld [vmem:[#allocation2 + $0xea0] sm:$0xff]  ;;  %v1014_v52 = vmul.f32 %v3155_v15, %v3397_v8  ;;  %v1015_v53 = vmul.f32 %v3155_v15, %v3399_v9  ;;  %v1025_v8 = vmul.f32 %v3155_v15, %v3435_v30 }
 0x16b   :  { %1497 = vst [vmem:[#allocation5 + $0xd38] sm:$0xff] %v985_v54  ;;  %1498 = vst [vmem:[#allocation5 + $0xd40] sm:$0xff] %v986_v59  ;;  %v3463_v42 = vld [vmem:[#allocation2 + $0xea8] sm:$0xff]  ;;  %v3465_v43 = vld [vmem:[#allocation2 + $0xeb0] sm:$0xff]  ;;  %v1016_v54 = vmul.f32 %v3155_v15, %v3401_v11 }
 0x16c   :  { %1499 = vst [vmem:[#allocation5 + $0xd48] sm:$0xff] %v987_v60  ;;  %1500 = vst [vmem:[#allocation5 + $0xd50] sm:$0xff] %v988_v61  ;;  %v3467_v44 = vld [vmem:[#allocation2 + $0xeb8] sm:$0xff]  ;;  %v498_v48 = vld [vmem:[#allocation2 + $0xec0] sm:$0xff]  ;;  %v1018_v60 = vmul.f32 %v3155_v15, %v3413_v18  ;;  %v1019_v61 = vmul.f32 %v3155_v15, %v3415_v19  ;;  %v1029_v18 = vmul.f32 %v3155_v15, %v3451_v37 }
 0x16d   :  { %1501 = vst [vmem:[#allocation5 + $0xd58] sm:$0xff] %v989_v62  ;;  %1502 = vst [vmem:[#allocation5 + $0xd60] sm:$0xff] %v990_v3  ;;  %v499_v49 = vld [vmem:[#allocation2 + $0xec8] sm:$0xff]  ;;  %v500_v50 = vld [vmem:[#allocation2 + $0xed0] sm:$0xff]  ;;  %v1020_v62 = vmul.f32 %v3155_v15, %v3417_v20  ;;  %v1034_v30 = vmul.f32 %v3155_v15, %v498_v48 }
 0x16e   :  { %1503 = vst [vmem:[#allocation5 + $0xd68] sm:$0xff] %v991_v4  ;;  %1504 = vst [vmem:[#allocation5 + $0xd70] sm:$0xff] %v992_v6  ;;  %v501_v51 = vld [vmem:[#allocation2 + $0xed8] sm:$0xff]  ;;  %v502_v56 = vld [vmem:[#allocation2 + $0xee0] sm:$0xff]  ;;  %v1022_v4 = vmul.f32 %v3155_v15, %v3429_v27  ;;  %v1023_v6 = vmul.f32 %v3155_v15, %v3431_v28 }
 0x16f   :  { %1505 = vst [vmem:[#allocation5 + $0xd78] sm:$0xff] %v993_v7  ;;  %1506 = vst [vmem:[#allocation5 + $0xd80] sm:$0xff] %v994_v13  ;;  %v503_v57 = vld [vmem:[#allocation2 + $0xee8] sm:$0xff]  ;;  %v504_v58 = vld [vmem:[#allocation2 + $0xef0] sm:$0xff]  ;;  %v1024_v7 = vmul.f32 %v3155_v15, %v3433_v29 }
 0x170   :  { %1507 = vst [vmem:[#allocation5 + $0xd88] sm:$0xff] %v995_v14  ;;  %1508 = vst [vmem:[#allocation5 + $0xd90] sm:$0xff] %v996_v16  ;;  %v505_v59 = vld [vmem:[#allocation2 + $0xef8] sm:$0xff]  ;;  %v506_v0 = vld [vmem:[#allocation2 + $0xf00] sm:$0xff]  ;;  %v1026_v14 = vmul.f32 %v3155_v15, %v3445_v35  ;;  %v1027_v16 = vmul.f32 %v3155_v15, %v3447_v36  ;;  %v1039_v37 = vmul.f32 %v3155_v15, %v503_v57 }
 0x171   :  { %1509 = vst [vmem:[#allocation5 + $0xd98] sm:$0xff] %v997_v17  ;;  %1510 = vst [vmem:[#allocation5 + $0xda0] sm:$0xff] %v998_v23  ;;  %v507_v1 = vld [vmem:[#allocation2 + $0xf08] sm:$0xff]  ;;  %v508_v2 = vld [vmem:[#allocation2 + $0xf10] sm:$0xff]  ;;  %v1028_v17 = vmul.f32 %v3155_v15, %v3449_v21  ;;  %v1030_v23 = vmul.f32 %v3155_v15, %v3461_v41  ;;  %v1038_v21 = vmul.f32 %v3155_v15, %v502_v56 }
 0x172   :  { %1511 = vst [vmem:[#allocation5 + $0xda8] sm:$0xff] %v999_v24  ;;  %1512 = vst [vmem:[#allocation5 + $0xdb0] sm:$0xff] %v1000_v25  ;;  %v509_v3 = vld [vmem:[#allocation2 + $0xf18] sm:$0xff]  ;;  %v510_v9 = vld [vmem:[#allocation2 + $0xf20] sm:$0xff]  ;;  %v1031_v24 = vmul.f32 %v3155_v15, %v3463_v42  ;;  %v1032_v25 = vmul.f32 %v3155_v15, %v3465_v43  ;;  %v1042_v42 = vmul.f32 %v3155_v15, %v506_v0 }
 0x173   :  { %1513 = vst [vmem:[#allocation5 + $0xdb8] sm:$0xff] %v1001_v26  ;;  %1514 = vst [vmem:[#allocation5 + $0xdc0] sm:$0xff] %v1002_v31  ;;  %v511_v11 = vld [vmem:[#allocation2 + $0xf28] sm:$0xff]  ;;  %v512_v12 = vld [vmem:[#allocation2 + $0xf30] sm:$0xff]  ;;  %v1033_v26 = vmul.f32 %v3155_v15, %v3467_v44  ;;  %v1035_v31 = vmul.f32 %v3155_v15, %v499_v49  ;;  %v1043_v43 = vmul.f32 %v3155_v15, %v507_v1 }
 0x174   :  { %1515 = vst [vmem:[#allocation5 + $0xdc8] sm:$0xff] %v1003_v32  ;;  %1516 = vst [vmem:[#allocation5 + $0xdd0] sm:$0xff] %v1004_v33  ;;  %v513_v13 = vld [vmem:[#allocation2 + $0xf38] sm:$0xff]  ;;  %v514_v19 = vld [vmem:[#allocation2 + $0xf40] sm:$0xff]  ;;  %v1036_v32 = vmul.f32 %v3155_v15, %v500_v50  ;;  %v1037_v33 = vmul.f32 %v3155_v15, %v501_v51  ;;  %v1044_v44 = vmul.f32 %v3155_v15, %v508_v2 }
 0x175   :  { %1517 = vst [vmem:[#allocation5 + $0xdd8] sm:$0xff] %v1005_v34  ;;  %1518 = vst [vmem:[#allocation5 + $0xde0] sm:$0xff] %v1006_v38  ;;  %v515_v20 = vld [vmem:[#allocation2 + $0xf48] sm:$0xff]  ;;  %v516_v22 = vld [vmem:[#allocation2 + $0xf50] sm:$0xff]  ;;  %v1040_v38 = vmul.f32 %v3155_v15, %v504_v58  ;;  %v1046_v48 = vmul.f32 %v3155_v15, %v510_v9  ;;  %v1047_v49 = vmul.f32 %v3155_v15, %v511_v11 }
 0x176   :  { %1519 = vst [vmem:[#allocation5 + $0xde8] sm:$0xff] %v1007_v39  ;;  %1520 = vst [vmem:[#allocation5 + $0xdf0] sm:$0xff] %v1008_v40  ;;  %v517_v27 = vld [vmem:[#allocation2 + $0xf58] sm:$0xff]  ;;  %v518_v28 = vld [vmem:[#allocation2 + $0xf60] sm:$0xff]  ;;  %v1041_v39 = vmul.f32 %v3155_v15, %v505_v59  ;;  %v1048_v50 = vmul.f32 %v3155_v15, %v512_v12  ;;  %v1049_v51 = vmul.f32 %v3155_v15, %v513_v13 }
 0x177   :  { %1521 = vst [vmem:[#allocation5 + $0xdf8] sm:$0xff] %v1009_v5  ;;  %1522 = vst [vmem:[#allocation5 + $0xe00] sm:$0xff] %v1010_v10  ;;  %v519_v29 = vld [vmem:[#allocation2 + $0xf68] sm:$0xff]  ;;  %v520_v34 = vld [vmem:[#allocation2 + $0xf70] sm:$0xff]  ;;  %v1045_v10 = vmul.f32 %v3155_v15, %v509_v3  ;;  %v1051_v56 = vmul.f32 %v3155_v15, %v515_v20  ;;  %v1052_v57 = vmul.f32 %v3155_v15, %v516_v22 }
 0x178   :  { %1523 = vst [vmem:[#allocation5 + $0xe08] sm:$0xff] %v1011_v45  ;;  %1524 = vst [vmem:[#allocation5 + $0xe10] sm:$0xff] %v1012_v46  ;;  %v521_v35 = vld [vmem:[#allocation2 + $0xf78] sm:$0xff]  ;;  %v522_v36 = vld [vmem:[#allocation2 + $0xf80] sm:$0xff]  ;;  %v1053_v58 = vmul.f32 %v3155_v15, %v517_v27  ;;  %v1056_v0 = vmul.f32 %v3155_v15, %v520_v34 }
 0x179   :  { %1525 = vst [vmem:[#allocation5 + $0xe18] sm:$0xff] %v1013_v47  ;;  %1526 = vst [vmem:[#allocation5 + $0xe20] sm:$0xff] %v1014_v52  ;;  %v523_v40 = vld [vmem:[#allocation2 + $0xf88] sm:$0xff]  ;;  %v524_v5 = vld [vmem:[#allocation2 + $0xf90] sm:$0xff]  ;;  %v1057_v1 = vmul.f32 %v3155_v15, %v521_v35 }
 0x17a   :  { %1527 = vst [vmem:[#allocation5 + $0xe28] sm:$0xff] %v1015_v53  ;;  %1528 = vst [vmem:[#allocation5 + $0xe30] sm:$0xff] %v1016_v54  ;;  %v525_v41 = vld [vmem:[#allocation2 + $0xf98] sm:$0xff]  ;;  %v526_v45 = vld [vmem:[#allocation2 + $0xfa0] sm:$0xff] }
 0x17b   :  { %1529 = vst [vmem:[#allocation5 + $0xe38] sm:$0xff] %v1017_v55  ;;  %1530 = vst [vmem:[#allocation5 + $0xe40] sm:$0xff] %v1018_v60  ;;  %v527_v46 = vld [vmem:[#allocation2 + $0xfa8] sm:$0xff]  ;;  %v528_v47 = vld [vmem:[#allocation2 + $0xfb0] sm:$0xff]  ;;  %v1050_v55 = vmul.f32 %v3155_v15, %v514_v19  ;;  %v1061_v9 = vmul.f32 %v3155_v15, %v525_v41  ;;  %v1062_v11 = vmul.f32 %v3155_v15, %v526_v45 }
 0x17c   :  { %1531 = vst [vmem:[#allocation5 + $0xe48] sm:$0xff] %v1019_v61  ;;  %1532 = vst [vmem:[#allocation5 + $0xe50] sm:$0xff] %v1020_v62  ;;  %v529_v52 = vld [vmem:[#allocation2 + $0xfb8] sm:$0xff]  ;;  %v530_v53 = vld [vmem:[#allocation2 + $0xfc0] sm:$0xff]  ;;  %v1054_v62 = vmul.f32 %v3155_v15, %v518_v28  ;;  %v1063_v12 = vmul.f32 %v3155_v15, %v527_v46  ;;  %v1064_v13 = vmul.f32 %v3155_v15, %v528_v47 }
 0x17d   :  { %1533 = vst [vmem:[#allocation5 + $0xe58] sm:$0xff] %v1021_v63  ;;  %1534 = vst [vmem:[#allocation5 + $0xe60] sm:$0xff] %v1022_v4  ;;  %v531_v54 = vld [vmem:[#allocation2 + $0xfc8] sm:$0xff]  ;;  %v532_v59 = vld [vmem:[#allocation2 + $0xfd0] sm:$0xff]  ;;  %v1055_v63 = vmul.f32 %v3155_v15, %v519_v29 }
 0x17e   :  { %1535 = vst [vmem:[#allocation5 + $0xe68] sm:$0xff] %v1023_v6  ;;  %1536 = vst [vmem:[#allocation5 + $0xe70] sm:$0xff] %v1024_v7  ;;  %v533_v60 = vld [vmem:[#allocation2 + $0xfd8] sm:$0xff]  ;;  %v534_v61 = vld [vmem:[#allocation2 + $0xfe0] sm:$0xff]  ;;  %v1058_v6 = vmul.f32 %v3155_v15, %v522_v36  ;;  %v1059_v7 = vmul.f32 %v3155_v15, %v523_v40 }
 0x17f   :  { %1537 = vst [vmem:[#allocation5 + $0xe78] sm:$0xff] %v1025_v8  ;;  %1538 = vst [vmem:[#allocation5 + $0xe80] sm:$0xff] %v1026_v14  ;;  %v535_v2 = vld [vmem:[#allocation2 + $0xfe8] sm:$0xff]  ;;  %v536_v3 = vld [vmem:[#allocation2 + $0xff0] sm:$0xff]  ;;  %v1060_v8 = vmul.f32 %v3155_v15, %v524_v5  ;;  %v1065_v14 = vmul.f32 %v3155_v15, %v529_v52  ;;  %v1069_v19 = vmul.f32 %v3155_v15, %v533_v60 }
 0x180   :  { %1539 = vst [vmem:[#allocation5 + $0xe88] sm:$0xff] %v1027_v16  ;;  %1540 = vst [vmem:[#allocation5 + $0xe90] sm:$0xff] %v1028_v17  ;;  %v537_v4 = vld [vmem:[#allocation2 + $0xff8] sm:$0xff]  ;;  %v1066_v16 = vmul.f32 %v3155_v15, %v530_v53  ;;  %v1067_v17 = vmul.f32 %v3155_v15, %v531_v54  ;;  %v1070_v20 = vmul.f32 %v3155_v15, %v534_v61 }
 0x181   :  { %1541 = vst [vmem:[#allocation5 + $0xe98] sm:$0xff] %v1029_v18  ;;  %1542 = vst [vmem:[#allocation5 + $0xea0] sm:$0xff] %v1030_v23  ;;  %v1068_v18 = vmul.f32 %v3155_v15, %v532_v59  ;;  %v1071_v22 = vmul.f32 %v3155_v15, %v535_v2  ;;  %v1072_v23 = vmul.f32 %v3155_v15, %v536_v3 }
 0x182   :  { %1543 = vst [vmem:[#allocation5 + $0xea8] sm:$0xff] %v1031_v24  ;;  %1544 = vst [vmem:[#allocation5 + $0xeb0] sm:$0xff] %v1032_v25  ;;  %v1073_v24 = vmul.f32 %v3155_v15, %v537_v4 }
 0x183   :  { %1545 = vst [vmem:[#allocation5 + $0xeb8] sm:$0xff] %v1033_v26  ;;  %1546 = vst [vmem:[#allocation5 + $0xec0] sm:$0xff] %v1034_v30 }
 0x184   :  { %1547 = vst [vmem:[#allocation5 + $0xec8] sm:$0xff] %v1035_v31  ;;  %1548 = vst [vmem:[#allocation5 + $0xed0] sm:$0xff] %v1036_v32 }
 0x185   :  { %1549 = vst [vmem:[#allocation5 + $0xed8] sm:$0xff] %v1037_v33  ;;  %1550 = vst [vmem:[#allocation5 + $0xee0] sm:$0xff] %v1038_v21 }
 0x186   :  { %1551 = vst [vmem:[#allocation5 + $0xee8] sm:$0xff] %v1039_v37  ;;  %1552 = vst [vmem:[#allocation5 + $0xef0] sm:$0xff] %v1040_v38 }
 0x187   :  { %1553 = vst [vmem:[#allocation5 + $0xef8] sm:$0xff] %v1041_v39  ;;  %1554 = vst [vmem:[#allocation5 + $0xf00] sm:$0xff] %v1042_v42 }
 0x188   :  { %1555 = vst [vmem:[#allocation5 + $0xf08] sm:$0xff] %v1043_v43  ;;  %1556 = vst [vmem:[#allocation5 + $0xf10] sm:$0xff] %v1044_v44 }
 0x189   :  { %1557 = vst [vmem:[#allocation5 + $0xf18] sm:$0xff] %v1045_v10  ;;  %1558 = vst [vmem:[#allocation5 + $0xf20] sm:$0xff] %v1046_v48 }
 0x18a   :  { %1559 = vst [vmem:[#allocation5 + $0xf28] sm:$0xff] %v1047_v49  ;;  %1560 = vst [vmem:[#allocation5 + $0xf30] sm:$0xff] %v1048_v50 }
 0x18b   :  { %1561 = vst [vmem:[#allocation5 + $0xf38] sm:$0xff] %v1049_v51  ;;  %1562 = vst [vmem:[#allocation5 + $0xf40] sm:$0xff] %v1050_v55 }
 0x18c   :  { %1563 = vst [vmem:[#allocation5 + $0xf48] sm:$0xff] %v1051_v56  ;;  %1564 = vst [vmem:[#allocation5 + $0xf50] sm:$0xff] %v1052_v57 }
 0x18d   :  { %1565 = vst [vmem:[#allocation5 + $0xf58] sm:$0xff] %v1053_v58  ;;  %1566 = vst [vmem:[#allocation5 + $0xf60] sm:$0xff] %v1054_v62 }
 0x18e   :  { %1567 = vst [vmem:[#allocation5 + $0xf68] sm:$0xff] %v1055_v63  ;;  %1568 = vst [vmem:[#allocation5 + $0xf70] sm:$0xff] %v1056_v0 }
 0x18f   :  { %1569 = vst [vmem:[#allocation5 + $0xf78] sm:$0xff] %v1057_v1  ;;  %1570 = vst [vmem:[#allocation5 + $0xf80] sm:$0xff] %v1058_v6 }
 0x190   :  { %1571 = vst [vmem:[#allocation5 + $0xf88] sm:$0xff] %v1059_v7  ;;  %1572 = vst [vmem:[#allocation5 + $0xf90] sm:$0xff] %v1060_v8 }
 0x191   :  { %1573 = vst [vmem:[#allocation5 + $0xf98] sm:$0xff] %v1061_v9  ;;  %1574 = vst [vmem:[#allocation5 + $0xfa0] sm:$0xff] %v1062_v11 }
 0x192   :  { %1575 = vst [vmem:[#allocation5 + $0xfa8] sm:$0xff] %v1063_v12  ;;  %1576 = vst [vmem:[#allocation5 + $0xfb0] sm:$0xff] %v1064_v13 }
 0x193   :  { %1577 = vst [vmem:[#allocation5 + $0xfb8] sm:$0xff] %v1065_v14  ;;  %1578 = vst [vmem:[#allocation5 + $0xfc0] sm:$0xff] %v1066_v16 }
 0x194   :  { %1579 = vst [vmem:[#allocation5 + $0xfc8] sm:$0xff] %v1067_v17  ;;  %1580 = vst [vmem:[#allocation5 + $0xfd0] sm:$0xff] %v1068_v18 }
 0x195   :  { %1581 = vst [vmem:[#allocation5 + $0xfd8] sm:$0xff] %v1069_v19  ;;  %1582 = vst [vmem:[#allocation5 + $0xfe0] sm:$0xff] %v1070_v20 }
 0x196   :  { %1583 = vst [vmem:[#allocation5 + $0xfe8] sm:$0xff] %v1071_v22  ;;  %1584 = vst [vmem:[#allocation5 + $0xff0] sm:$0xff] %v1072_v23 }
 0x197   :  { %1585 = vst [vmem:[#allocation5 + $0xff8] sm:$0xff] %v1073_v24 }
 0x198   :  { %1643 = shalt.err (!%p1640_p12)
}
 0x199   :  { %s1644_s6 = scalar_lea.hbm %s3574_s2, 65536 }
 0x19a   :  { %p1645_p13 = scmp.ne.s32.totalorder %s3574_s2, %s1644_s6  ;;  %p1648_p0 = scmp.lt.u32.totalorder %s1644_s6, %s3574_s2 }
 0x19c   :  { %p1650_p1 = pnand %p1648_p0, %p1645_p13 }
 0x19e   :  { %1653 = shalt.err (!%p1650_p1)
}
 0x19f   :  { %1597 = dma.vmem_to_hbm [thread:$0]  %s1592_s30, 65536, %s3574_s2, [#allocation4], %s1659_s19, %s1659_s19, %s1660_s20  }
 0x1a0   :  { %1656 = dma.done.wait [#allocation4], 65536  }
 0x1a1   :  { %1657 = vsyncadd [#allocation4], 4294901760 }
 0x1a2   :  { %1601 = vsyncpa [#allocation3], 1 }
 0x1a3   :  { %1602 = vsyncpa [#allocation4], 1 }

</bundles_post_ra>
